<compile_context>
chip_gen: v7x
topology: tpu7x:2x2x1
jax: 0.10.0
libtpu: 0.0.40
codegen_flags: <defaults>
</compile_context>

<pallas_src>
import jax
import jax.numpy as jnp
from jax.experimental import pallas as pl
from jax.experimental.pallas import tpu as pltpu

LANE = 128
SUBLANE = 8


def _round_up(v, m):
    return (v + m - 1) // m * m


def _lowbias32(x):
    """Integer hash: int32 -> well-mixed int32. Uses arithmetic shift + mask to emulate logical
    shifts so everything stays in plain int32 jnp ops (lowers on Mosaic and in interpret mode)."""
    x = jnp.bitwise_xor(x, jnp.bitwise_and(x >> 16, 0xFFFF))
    x = x * jnp.int32(0x21F0AAAD)
    x = jnp.bitwise_xor(x, jnp.bitwise_and(x >> 15, 0x1FFFF))
    x = x * jnp.int32(0x735A2D97)
    x = jnp.bitwise_xor(x, jnp.bitwise_and(x >> 15, 0x1FFFF))
    return x


def _std_normal_from_bits(bits):
    """N(0,1) from 32 hashed bits via the A&S 26.2.23 inverse-CDF rational approximation
    (|err| < 4.5e-4, no trig): 1 log + 1 sqrt + 1 div per element, rest is cheap VALU work."""
    u = (jnp.bitwise_and(bits >> 8, 0xFFFFFF).astype(jnp.float32) + 0.5) * (1.0 / 16777216.0)
    p = jnp.minimum(u, 1.0 - u)                       # (0, 0.5]
    t = jnp.sqrt(-2.0 * jnp.log(p))
    num = 2.515517 + t * (0.802853 + t * 0.010328)
    den = 1.0 + t * (1.432788 + t * (0.189269 + t * 0.001308))
    mag = t - num / den
    return jnp.where(u < 0.5, -mag, mag)


def _sample_kernel(seed_ref, x_ref, wmu_ref, wls_ref, b_ref, o_ref, acc_ref):
    n = pl.program_id(1)
    k = pl.program_id(2)
    nk = pl.num_programs(2)

    @pl.when(k == 0)
    def _():
        acc_ref[...] = jnp.zeros_like(acc_ref)

    # Deterministic, tiling-invariant per-element counter over the padded (i_pad, o_pad) weight.
    tk_, tn_ = wmu_ref.shape
    row = jax.lax.broadcasted_iota(jnp.int32, (tk_, tn_), 0) + k * tk_
    col = jax.lax.broadcasted_iota(jnp.int32, (tk_, tn_), 1) + n * tn_
    idx = row * (pl.num_programs(1) * tn_) + col
    bits = _lowbias32(jnp.bitwise_xor(idx, seed_ref[0]))
    eps = _std_normal_from_bits(bits)

    # W tiles arrive pre-transposed as (tk, tn): plain matmul, no in-kernel relayout.
    w = wmu_ref[...] + jnp.exp(wls_ref[...]) * eps
    acc_ref[...] += jnp.dot(x_ref[...], w, preferred_element_type=jnp.float32)

    @pl.when(k == nk - 1)
    def _():
        o_ref[...] = (acc_ref[...] + b_ref[...]).astype(o_ref.dtype)


def _mean_kernel(x_ref, wmu_ref, b_ref, o_ref, acc_ref):
    k = pl.program_id(2)

    @pl.when(k == 0)
    def _():
        acc_ref[...] = jnp.zeros_like(acc_ref)

    acc_ref[...] += jnp.dot(x_ref[...], wmu_ref[...], preferred_element_type=jnp.float32)

    @pl.when(k == pl.num_programs(2) - 1)
    def _():
        o_ref[...] = (acc_ref[...] + b_ref[...]).astype(o_ref.dtype)


def _tile_budget():
    """Generation-aware (tb_max, tn_max, tk_max, scoped-vmem-limit)."""
    try:
        vmem_cap = int(pltpu.get_tpu_info().vmem_capacity_bytes)
    except Exception:
        vmem_cap = 64 * 1024 * 1024                   # conservative (v7x-sized) default
    if vmem_cap >= 100 * 1024 * 1024:                 # v5e / v6e: 128 MiB physical
        return 256, 1024, 2048, 100 * 1024 * 1024
    # v7x: 64 MiB physical; 2 weight streams x 2 bufs (16 MiB) + sampled-weight temporaries must fit.
    return 256, 1024, 1024, 48 * 1024 * 1024


def bayesian_layer_forward(x, weight_mu, weight_log_sigma, bias_mu, bias_log_sigma,
                           *, sample=True, key=None):
    """Pallas TPU forward pass of BayesianLayer (matches F.linear(x, W_sampled, b_sampled))."""
    B, in_features = x.shape
    out_features = weight_mu.shape[0]
    dtype = x.dtype

    tb_max, tn_max, tk_max, vmem_limit = _tile_budget()

    b8 = _round_up(B, SUBLANE)
    tb = min(tb_max, b8)
    b_pad = _round_up(b8, tb)

    o128 = _round_up(out_features, LANE)
    if o128 >= 2 * LANE:
        # Keep >= 2 programs on the parallel N axis so megacore parts (v7x) use both TensorCores.
        tn = min(tn_max, _round_up((o128 + 1) // 2, LANE))
    else:
        tn = o128
    o_pad = _round_up(out_features, tn)

    tk = min(tk_max, _round_up(in_features, LANE))
    i_pad = _round_up(in_features, tk)

    def pad2(a, r, c, cv=0.0):
        return jnp.pad(a, ((0, r - a.shape[0]), (0, c - a.shape[1])), constant_values=cv)

    x_p = pad2(x, b_pad, i_pad)
    # Pre-transpose once: kernel contracts (tb,tk) x (tk,tn) with no per-tile relayout.
    wmu_p = pad2(weight_mu.T, i_pad, o_pad)

    grid = (b_pad // tb, o_pad // tn, i_pad // tk)
    out_shape = jax.ShapeDtypeStruct((b_pad, o_pad), dtype)
    cparams = pltpu.CompilerParams(
        dimension_semantics=("parallel", "parallel", "arbitrary"),
        vmem_limit_bytes=vmem_limit)

    if sample:
        if key is None:
            key = jax.random.PRNGKey(0)  # NOTE: fixed default key => identical noise every call
        k_seed, k_bias = jax.random.split(key)
        seed = jax.random.randint(k_seed, (1,), 0, jnp.iinfo(jnp.int32).max, dtype=jnp.int32)
        # torch.rand_like -> U[0,1) bias epsilon; bias is tiny, so sample it in plain JAX here.
        bias_eps = jax.random.uniform(k_bias, bias_mu.shape, dtype=jnp.float32)
        bias = bias_mu.astype(jnp.float32) + jnp.exp(bias_log_sigma.astype(jnp.float32)) * bias_eps
        # Pad log_sigma with -30 so padded weight entries are ~0 (mu pad), not N(0,1) garbage.
        wls_p = pad2(weight_log_sigma.T, i_pad, o_pad, cv=-30.0)
        bias_p = pad2(bias.reshape(1, -1), 1, o_pad)

        grid_spec = pltpu.PrefetchScalarGridSpec(
            num_scalar_prefetch=1,
            grid=grid,
            in_specs=[
                pl.BlockSpec((tb, tk), lambda b, n, k, s: (b, k)),
                pl.BlockSpec((tk, tn), lambda b, n, k, s: (k, n)),
                pl.BlockSpec((tk, tn), lambda b, n, k, s: (k, n)),
                pl.BlockSpec((1, tn),  lambda b, n, k, s: (0, n)),
            ],
            out_specs=pl.BlockSpec((tb, tn), lambda b, n, k, s: (b, n)),
            scratch_shapes=[pltpu.VMEM((tb, tn), jnp.float32)],
        )
        out = pl.pallas_call(
            _sample_kernel,
            out_shape=out_shape,
            grid_spec=grid_spec,
            compiler_params=cparams,
        )(seed, x_p, wmu_p, wls_p, bias_p)
    else:
        bias_p = pad2(bias_mu.astype(jnp.float32).reshape(1, -1), 1, o_pad)
        grid_spec = pltpu.PrefetchScalarGridSpec(
            num_scalar_prefetch=0,
            grid=grid,
            in_specs=[
                pl.BlockSpec((tb, tk), lambda b, n, k: (b, k)),
                pl.BlockSpec((tk, tn), lambda b, n, k: (k, n)),
                pl.BlockSpec((1, tn),  lambda b, n, k: (0, n)),
            ],
            out_specs=pl.BlockSpec((tb, tn), lambda b, n, k: (b, n)),
            scratch_shapes=[pltpu.VMEM((tb, tn), jnp.float32)],
        )
        out = pl.pallas_call(
            _mean_kernel,
            out_shape=out_shape,
            grid_spec=grid_spec,
            compiler_params=cparams,
        )(x_p, wmu_p, bias_p)

    return out[:B, :out_features]


def init_bayesian_layer_params(in_features, out_features, key):
    """Deterministic parameter init mirroring the PyTorch __init__."""
    (kwmu,) = jax.random.split(key, 1)
    weight_mu = 0.1 * jax.random.normal(kwmu, (out_features, in_features), dtype=jnp.float32)
    weight_log_sigma = jnp.full((out_features, in_features), -3.0, dtype=jnp.float32)
    bias_mu = jnp.zeros((out_features,), dtype=jnp.float32)
    bias_log_sigma = jnp.full((out_features,), -3.0, dtype=jnp.float32)
    return weight_mu, weight_log_sigma, bias_mu, bias_log_sigma


if __name__ == "__main__":
    # Small, deterministic example: batch=8, in_features=32, out_features=16.
    B, IN, OUT = 8, 32, 16
    root = jax.random.PRNGKey(0)
    k_param, k_x, k_noise = jax.random.split(root, 3)

    weight_mu, weight_log_sigma, bias_mu, bias_log_sigma = init_bayesian_layer_params(IN, OUT, k_param)
    x = jax.random.normal(k_x, (B, IN), dtype=jnp.float32)

    # sample=True path (in-kernel reparameterized weight sampling).
    y_sample = bayesian_layer_forward(
        x, weight_mu, weight_log_sigma, bias_mu, bias_log_sigma, sample=True, key=k_noise)
    jax.block_until_ready(y_sample)

    # sample=False path (means only; slim kernel, no log_sigma / eps work).
    y_mean = bayesian_layer_forward(
        x, weight_mu, weight_log_sigma, bias_mu, bias_log_sigma, sample=False)
    jax.block_until_ready(y_mean)

    # Correctness checks.
    ref = x @ weight_mu.T + bias_mu
    assert y_sample.shape == (B, OUT) and y_mean.shape == (B, OUT)
    assert jnp.allclose(y_mean, ref, atol=1e-5, rtol=1e-5)
    assert bool(jnp.all(jnp.isfinite(y_sample)))
    diff = jnp.abs(y_sample - y_mean)
    # Sampled output is a small, non-zero perturbation of the mean output (sigma = exp(-3) ~= 0.05).
    assert float(jnp.max(diff)) < 3.0
    assert float(jnp.max(diff)) > 0.0

    # TODO(synk): kl_divergence() is a tiny training-time scalar reduction; left in plain JAX
    # rather than a dedicated Pallas kernel.
    print("KERNEL_OK")
</pallas_src>

<mosaic_0001>
module attributes {stable_mosaic.version = 11 : i64} {
  func.func @_sample_kernel(%arg0: i32, %arg1: i32, %arg2: i32, %arg3: memref<1xi32, #tpu.memory_space<smem>>, %arg4: memref<8x128xf32, #tpu.memory_space<vmem>>, %arg5: memref<128x128xf32, #tpu.memory_space<vmem>>, %arg6: memref<128x128xf32, #tpu.memory_space<vmem>>, %arg7: memref<1x128xf32, #tpu.memory_space<vmem>>, %arg8: memref<8x128xf32, #tpu.memory_space<vmem>>, %arg9: memref<8x128xf32, #tpu.memory_space<vmem>>) attributes {dimension_semantics = [#tpu.dimension_semantics<parallel>, #tpu.dimension_semantics<parallel>, #tpu.dimension_semantics<arbitrary>], iteration_bounds = array<i64: 1, 1, 1>, scalar_prefetch = 1 : i64, scratch_operands = 1 : i64, tpu.core_type = #tpu.core_type<tc>, window_params = [{transform_indices = @transform_0, window_bounds = array<i64: 8, 128>}, {transform_indices = @transform_1, window_bounds = array<i64: 128, 128>}, {transform_indices = @transform_2, window_bounds = array<i64: 128, 128>}, {transform_indices = @transform_3, window_bounds = array<i64: 1, 128>}, {transform_indices = @transform_4, window_bounds = array<i64: 8, 128>}]} {
    %c0_i32 = arith.constant 0 : i32
    %0 = arith.cmpi eq, %arg2, %c0_i32 : i32
    %1 = arith.extui %0 : i1 to i32
    %c0_i32_0 = arith.constant 0 : i32
    %2 = arith.cmpi ne, %1, %c0_i32_0 : i32
    scf.if %2 {
      %cst_30 = arith.constant 0.000000e+00 : f32
      %89 = vector.broadcast %cst_30 : f32 to vector<8x128xf32>
      %c0_31 = arith.constant 0 : index
      %c0_32 = arith.constant 0 : index
      %90 = vector.load %arg9[%c0_31, %c0_32] : memref<8x128xf32, #tpu.memory_space<vmem>>, vector<8x128xf32>
      tpu.vector_store %arg9[%c0_31, %c0_32], %89 {strides = array<i32>} : memref<8x128xf32, #tpu.memory_space<vmem>>, vector<8x128xf32>,
    } else {
    }
    %3 = tpu.iota {dimensions = array<i32: 0>} : vector<128x128xi32>
    %c128_i32 = arith.constant 128 : i32
    %4 = arith.muli %arg2, %c128_i32 : i32
    %5 = vector.broadcast %4 : i32 to vector<128x128xi32>
    %6 = arith.addi %3, %5 : vector<128x128xi32>
    %7 = tpu.iota {dimensions = array<i32: 1>} : vector<128x128xi32>
    %c128_i32_1 = arith.constant 128 : i32
    %8 = arith.muli %arg1, %c128_i32_1 : i32
    %9 = vector.broadcast %8 : i32 to vector<128x128xi32>
    %10 = arith.addi %7, %9 : vector<128x128xi32>
    %c128_i32_2 = arith.constant 128 : i32
    %11 = vector.broadcast %c128_i32_2 : i32 to vector<128x128xi32>
    %12 = arith.muli %6, %11 : vector<128x128xi32>
    %13 = arith.addi %12, %10 : vector<128x128xi32>
    %c0 = arith.constant 0 : index
    %14 = memref.load %arg3[%c0] : memref<1xi32, #tpu.memory_space<smem>>
    %15 = vector.broadcast %14 : i32 to vector<128x128xi32>
    %16 = arith.xori %13, %15 : vector<128x128xi32>
    %c16_i32 = arith.constant 16 : i32
    %17 = vector.broadcast %c16_i32 : i32 to vector<128x128xi32>
    %18 = arith.shrsi %16, %17 : vector<128x128xi32>
    %c65535_i32 = arith.constant 65535 : i32
    %19 = vector.broadcast %c65535_i32 : i32 to vector<128x128xi32>
    %20 = arith.andi %18, %19 : vector<128x128xi32>
    %21 = arith.xori %16, %20 : vector<128x128xi32>
    %c569420461_i32 = arith.constant 569420461 : i32
    %22 = vector.broadcast %c569420461_i32 : i32 to vector<128x128xi32>
    %23 = arith.muli %21, %22 : vector<128x128xi32>
    %c15_i32 = arith.constant 15 : i32
    %24 = vector.broadcast %c15_i32 : i32 to vector<128x128xi32>
    %25 = arith.shrsi %23, %24 : vector<128x128xi32>
    %c131071_i32 = arith.constant 131071 : i32
    %26 = vector.broadcast %c131071_i32 : i32 to vector<128x128xi32>
    %27 = arith.andi %25, %26 : vector<128x128xi32>
    %28 = arith.xori %23, %27 : vector<128x128xi32>
    %c1935289751_i32 = arith.constant 1935289751 : i32
    %29 = vector.broadcast %c1935289751_i32 : i32 to vector<128x128xi32>
    %30 = arith.muli %28, %29 : vector<128x128xi32>
    %c15_i32_3 = arith.constant 15 : i32
    %31 = vector.broadcast %c15_i32_3 : i32 to vector<128x128xi32>
    %32 = arith.shrsi %30, %31 : vector<128x128xi32>
    %c131071_i32_4 = arith.constant 131071 : i32
    %33 = vector.broadcast %c131071_i32_4 : i32 to vector<128x128xi32>
    %34 = arith.andi %32, %33 : vector<128x128xi32>
    %35 = arith.xori %30, %34 : vector<128x128xi32>
    %c8_i32 = arith.constant 8 : i32
    %36 = vector.broadcast %c8_i32 : i32 to vector<128x128xi32>
    %37 = arith.shrsi %35, %36 : vector<128x128xi32>
    %c16777215_i32 = arith.constant 16777215 : i32
    %38 = vector.broadcast %c16777215_i32 : i32 to vector<128x128xi32>
    %39 = arith.andi %37, %38 : vector<128x128xi32>
    %40 = arith.sitofp %39 : vector<128x128xi32> to vector<128x128xf32>
    %cst = arith.constant 5.000000e-01 : f32
    %41 = vector.broadcast %cst : f32 to vector<128x128xf32>
    %42 = arith.addf %40, %41 : vector<128x128xf32>
    %cst_5 = arith.constant 5.96046448E-8 : f32
    %43 = vector.broadcast %cst_5 : f32 to vector<128x128xf32>
    %44 = arith.mulf %42, %43 : vector<128x128xf32>
    %cst_6 = arith.constant 1.000000e+00 : f32
    %45 = vector.broadcast %cst_6 : f32 to vector<128x128xf32>
    %46 = arith.subf %45, %44 : vector<128x128xf32>
    %47 = arith.minimumf %44, %46 : vector<128x128xf32>
    %48 = math.log %47 : vector<128x128xf32>
    %cst_7 = arith.constant -2.000000e+00 : f32
    %49 = vector.broadcast %cst_7 : f32 to vector<128x128xf32>
    %50 = arith.mulf %49, %48 : vector<128x128xf32>
    %51 = math.sqrt %50 : vector<128x128xf32>
    %cst_8 = arith.constant 1.032800e-02 : f32
    %52 = vector.broadcast %cst_8 : f32 to vector<128x128xf32>
    %53 = arith.mulf %51, %52 : vector<128x128xf32>
    %cst_9 = arith.constant 0.802852988 : f32
    %54 = vector.broadcast %cst_9 : f32 to vector<128x128xf32>
    %55 = arith.addf %54, %53 : vector<128x128xf32>
    %56 = arith.mulf %51, %55 : vector<128x128xf32>
    %cst_10 = arith.constant 2.515517 : f32
    %57 = vector.broadcast %cst_10 : f32 to vector<128x128xf32>
    %58 = arith.addf %57, %56 : vector<128x128xf32>
    %cst_11 = arith.constant 1.308000e-03 : f32
    %59 = vector.broadcast %cst_11 : f32 to vector<128x128xf32>
    %60 = arith.mulf %51, %59 : vector<128x128xf32>
    %cst_12 = arith.constant 1.892690e-01 : f32
    %61 = vector.broadcast %cst_12 : f32 to vector<128x128xf32>
    %62 = arith.addf %61, %60 : vector<128x128xf32>
    %63 = arith.mulf %51, %62 : vector<128x128xf32>
    %cst_13 = arith.constant 1.43278801 : f32
    %64 = vector.broadcast %cst_13 : f32 to vector<128x128xf32>
    %65 = arith.addf %64, %63 : vector<128x128xf32>
    %66 = arith.mulf %51, %65 : vector<128x128xf32>
    %cst_14 = arith.constant 1.000000e+00 : f32
    %67 = vector.broadcast %cst_14 : f32 to vector<128x128xf32>
    %68 = arith.addf %67, %66 : vector<128x128xf32>
    %69 = arith.divf %58, %68 : vector<128x128xf32>
    %70 = arith.subf %51, %69 : vector<128x128xf32>
    %cst_15 = arith.constant 5.000000e-01 : f32
    %71 = vector.broadcast %cst_15 : f32 to vector<128x128xf32>
    %72 = arith.cmpf olt, %44, %71 : vector<128x128xf32>
    %cst_16 = arith.constant 0.000000e+00 : f32
    %73 = vector.broadcast %cst_16 : f32 to vector<128x128xf32>
    %74 = arith.subf %73, %70 : vector<128x128xf32>
    %75 = arith.select %72, %74, %70 : vector<128x128xi1>, vector<128x128xf32>
    %c0_17 = arith.constant 0 : index
    %c0_18 = arith.constant 0 : index
    %76 = vector.load %arg5[%c0_17, %c0_18] : memref<128x128xf32, #tpu.memory_space<vmem>>, vector<128x128xf32>
    %c0_19 = arith.constant 0 : index
    %c0_20 = arith.constant 0 : index
    %77 = vector.load %arg6[%c0_19, %c0_20] : memref<128x128xf32, #tpu.memory_space<vmem>>, vector<128x128xf32>
    %78 = math.exp %77 : vector<128x128xf32>
    %79 = arith.mulf %78, %75 : vector<128x128xf32>
    %80 = arith.addf %76, %79 : vector<128x128xf32>
    %c0_21 = arith.constant 0 : index
    %c0_22 = arith.constant 0 : index
    %81 = vector.load %arg9[%c0_21, %c0_22] : memref<8x128xf32, #tpu.memory_space<vmem>>, vector<8x128xf32>
    %c0_23 = arith.constant 0 : index
    %c0_24 = arith.constant 0 : index
    %82 = vector.load %arg4[%c0_23, %c0_24] : memref<8x128xf32, #tpu.memory_space<vmem>>, vector<8x128xf32>
    %cst_25 = arith.constant dense<0.000000e+00> : vector<8x128xf32>
    %83 = tpu.matmul %82, %80, %cst_25 {dimension_numbers = #tpu.dot_dimension_numbers<[1], [0], [0], [1], [0, 0, 1, 1], [], []>} : vector<8x128xf32>, vector<128x128xf32>, vector<8x128xf32> -> vector<8x128xf32>
    %84 = arith.addf %81, %83 : vector<8x128xf32>
    %c0_26 = arith.constant 0 : index
    %c0_27 = arith.constant 0 : index
    %85 = vector.load %arg9[%c0_26, %c0_27] : memref<8x128xf32, #tpu.memory_space<vmem>>, vector<8x128xf32>
    tpu.vector_store %arg9[%c0_26, %c0_27], %84 {strides = array<i32>} : memref<8x128xf32, #tpu.memory_space<vmem>>, vector<8x128xf32>,
    %c0_i32_28 = arith.constant 0 : i32
    %86 = arith.cmpi eq, %arg2, %c0_i32_28 : i32
    %87 = arith.extui %86 : i1 to i32
    %c0_i32_29 = arith.constant 0 : i32
    %88 = arith.cmpi ne, %87, %c0_i32_29 : i32
    scf.if %88 {
      %c0_30 = arith.constant 0 : index
      %c0_31 = arith.constant 0 : index
      %89 = vector.load %arg9[%c0_30, %c0_31] : memref<8x128xf32, #tpu.memory_space<vmem>>, vector<8x128xf32>
      %c0_32 = arith.constant 0 : index
      %c0_33 = arith.constant 0 : index
      %90 = vector.load %arg7[%c0_32, %c0_33] : memref<1x128xf32, #tpu.memory_space<vmem>>, vector<1x128xf32>
      %91 = vector.broadcast %90 : vector<1x128xf32> to vector<8x128xf32>
      %92 = arith.addf %89, %91 : vector<8x128xf32>
      %c0_34 = arith.constant 0 : index
      %c0_35 = arith.constant 0 : index
      %93 = vector.load %arg8[%c0_34, %c0_35] : memref<8x128xf32, #tpu.memory_space<vmem>>, vector<8x128xf32>
      tpu.vector_store %arg8[%c0_34, %c0_35], %92 {strides = array<i32>} : memref<8x128xf32, #tpu.memory_space<vmem>>, vector<8x128xf32>,
    } else {
    }
    return
  }
  func.func @transform_0(%arg0: i32, %arg1: i32, %arg2: i32, %arg3: memref<1xi32, #tpu.memory_space<smem>>) -> (i32, i32) {
    %c0_i32 = arith.constant 0 : i32
    return %arg0, %arg2 : i32, i32
  }
  func.func @transform_1(%arg0: i32, %arg1: i32, %arg2: i32, %arg3: memref<1xi32, #tpu.memory_space<smem>>) -> (i32, i32) {
    %c0_i32 = arith.constant 0 : i32
    return %arg2, %arg1 : i32, i32
  }
  func.func @transform_2(%arg0: i32, %arg1: i32, %arg2: i32, %arg3: memref<1xi32, #tpu.memory_space<smem>>) -> (i32, i32) {
    %c0_i32 = arith.constant 0 : i32
    return %arg2, %arg1 : i32, i32
  }
  func.func @transform_3(%arg0: i32, %arg1: i32, %arg2: i32, %arg3: memref<1xi32, #tpu.memory_space<smem>>) -> (i32, i32) {
    %c0_i32 = arith.constant 0 : i32
    %c0_i32_0 = arith.constant 0 : i32
    return %c0_i32, %arg1 : i32, i32
  }
  func.func @transform_4(%arg0: i32, %arg1: i32, %arg2: i32, %arg3: memref<1xi32, #tpu.memory_space<smem>>) -> (i32, i32) {
    %c0_i32 = arith.constant 0 : i32
    return %arg0, %arg1 : i32, i32
  }
}

</mosaic_0001>

<bundles_post_ra>
// kernel: tpu_custom_call.1
= control target key start
LH: loop header
LB: loop body
LE: loop exit
PB: predicated region body
PF: predicated region fallthrough
CT: control target
= control target key end

     0   :  { %11 = vsyncpa [#allocation6], 0  ;;  %s1978_s0 = inlined_call_operand.<no memory space> [shape: s32[1], index: 0, kind: input, shape index: {}]   ;;  %s1979_s1 = inlined_call_operand.hbm [shape: f32[8,128], index: 1, kind: input, shape index: {}]   ;;  %s1980_s2 = inlined_call_operand.hbm [shape: f32[128,128], index: 2, kind: input, shape index: {}]   ;;  %s1981_s3 = inlined_call_operand.hbm [shape: f32[128,128], index: 3, kind: input, shape index: {}]   ;;  %s1982_s4 = inlined_call_operand.vmem [shape: f32[1,128], index: 4, kind: input, shape index: {}]   ;;  %s1983_s5 = inlined_call_operand.hbm [shape: f32[8,128], index: 5, kind: output, shape index: {}]  }
   0x1   :  { %12 = vsyncpa [#allocation9], 0 }
   0x2   :  { %13 = vsyncpa [#allocation7], 0  ;;  %s1429_s18 = smov [#allocation8]   ;;  %s1335_s22 = scalar_lea.hbm %s1980_s2, 2048 }
   0x3   :  { %s29_s19 = sshll.u32 %s1429_s18, 4  ;;  %p1336_p0 = scmp.ne.s32.totalorder %s1980_s2, %s1335_s22  ;;  %s30_s19 = int_to_ptr.vmem [resolvable:$true] %s29_s19 }
   0x4   :  { %p1339_p1 = scmp.lt.u32.totalorder %s1335_s22, %s1980_s2 }
   0x6   :  { %p1341_p2 = pnand %p1339_p1, %p1336_p0 }
   0x8   :  { %1344 = shalt.err (!%p1341_p2)
}
   0x9   :  { %s1345_s27 = scalar_lea.vmem %s30_s19, 2048  ;;  %p1350_p4 = scmp.lt.s32.totalorder %s30_s19, %s30_s19 }
   0xa   :  { %p1346_p3 = scmp.ne.s32.totalorder %s30_s19, %s1345_s27  ;;  %p1351_p5 = scmp.lt.s32.totalorder %s1345_s27, %s1345_s27 }
   0xc   :  { %p1352_p6 = por %p1351_p5, %p1350_p4 }
   0xe   :  { %p1353_p7 = pnand %p1352_p6, %p1346_p3 }
  0x10   :  { %1356 = shalt.err (!%p1353_p7)
}
  0x11   :  { %s1430_s28 = smov 128   ;;  %s1431_s29 = smov 8  }
  0x12   :  { %35 = dma.hbm_to_vmem [thread:$0]  %s1980_s2, 2048, %s30_s19, [#allocation9], %s1430_s28, %s1430_s28, %s1431_s29  }
  0x13   :  { %s1432_s7 = smov [#allocation5]   ;;  %s1433_s9 = smov [#allocation10]  }
  0x14   :  { %s20_s8 = sshll.u32 %s1432_s7, 4  ;;  %s41_s10 = sshll.u32 %s1433_s9, 4  ;;  %s21_s8 = int_to_ptr.vmem [resolvable:$true] %s20_s8  ;;  %s42_s10 = int_to_ptr.vmem [resolvable:$true] %s41_s10 }
  0x15   :  { %s1357_s13 = scalar_lea.hbm %s1979_s1, 128 }
  0x16   :  { %p1358_p8 = scmp.ne.s32.totalorder %s1979_s1, %s1357_s13  ;;  %p1361_p9 = scmp.lt.u32.totalorder %s1357_s13, %s1979_s1 }
  0x18   :  { %p1363_p10 = pnand %p1361_p9, %p1358_p8 }
  0x1a   :  { %1366 = shalt.err (!%p1363_p10)
}
  0x1b   :  { %s1367_s2 = scalar_lea.vmem %s21_s8, 128  ;;  %p1372_p12 = scmp.lt.s32.totalorder %s21_s8, %s21_s8 }
  0x1c   :  { %p1368_p11 = scmp.ne.s32.totalorder %s21_s8, %s1367_s2  ;;  %p1373_p13 = scmp.lt.s32.totalorder %s1367_s2, %s1367_s2 }
  0x1e   :  { %p1374_p0 = por %p1373_p13, %p1372_p12 }
  0x20   :  { %p1375_p1 = pnand %p1374_p0, %p1368_p11 }
  0x22   :  { %1378 = shalt.err (!%p1375_p1)
}
  0x23   :  { %23 = dma.hbm_to_vmem [thread:$0]  %s1979_s1, 128, %s21_s8, [#allocation6]  }
  0x24   :  { %s1379_s22 = scalar_lea.hbm %s1981_s3, 2048 }
  0x25   :  { %p1380_p2 = scmp.ne.s32.totalorder %s1981_s3, %s1379_s22  ;;  %p1383_p3 = scmp.lt.u32.totalorder %s1379_s22, %s1981_s3 }
  0x27   :  { %p1385_p4 = pnand %p1383_p3, %p1380_p2 }
  0x29   :  { %1388 = shalt.err (!%p1385_p4)
}
  0x2a   :  { %s1389_s27 = scalar_lea.vmem %s42_s10, 2048  ;;  %p1394_p6 = scmp.lt.s32.totalorder %s42_s10, %s42_s10 }
  0x2b   :  { %p1390_p5 = scmp.ne.s32.totalorder %s42_s10, %s1389_s27  ;;  %p1395_p7 = scmp.lt.s32.totalorder %s1389_s27, %s1389_s27 }
  0x2d   :  { %p1396_p8 = por %p1395_p7, %p1394_p6 }
  0x2f   :  { %p1397_p9 = pnand %p1396_p8, %p1390_p5 }
  0x31   :  { %1400 = shalt.err (!%p1397_p9)
}
  0x32   :  { %47 = dma.hbm_to_vmem [thread:$0]  %s1981_s3, 2048, %s42_s10, [#allocation9], %s1430_s28, %s1430_s28, %s1431_s29  }
  0x33   :  { %1423 = dma.done.wait [#allocation6], 128  }
  0x34   :  { %1424 = vsyncadd [#allocation6], 4294967168 }
  0x35   :  { %1425 = dma.done.wait [#allocation9], 4096  }
  0x36   :  { %1426 = vsyncadd [#allocation9], 4294963200  ;;  %v64_v0 = vlaneseq  ;;  %v1434_v1 = vmov 0.0|0.0   ;;  %v1522_v8 = vstv %s1978_s0  ;;  %s1437_s6 = smov [#allocation11]  }
  0x37   :  { %1174 = vmatprep.subr.bf16.mxu0 %v1434_v1  ;;  %s1047_s7 = sshll.u32 %s1437_s6, 4  ;;  %s1048_s7 = int_to_ptr.vmem [resolvable:$true] %s1047_s7 }
  0x38   :  { %v1511_v2 = vshrl.u32 %v64_v0, 7  ;;  %v1513_v3 = vand.u32 127, %v64_v0  ;;  %s1401_s8 = scalar_lea.vmem %s1048_s7, 128  ;;  %p1406_p11 = scmp.lt.s32.totalorder %s1048_s7, %s1048_s7 }
  0x39   :  { %p1402_p10 = scmp.ne.s32.totalorder %s1048_s7, %s1401_s8  ;;  %p1407_p12 = scmp.lt.s32.totalorder %s1401_s8, %s1401_s8 }
  0x3a   :  { %v66_v4 = vadd.s32 8, %v1511_v2  ;;  %v104_v5 = vmul.u32 128, %v1511_v2  ;;  %v67_v6 = vadd.s32 16, %v1511_v2  ;;  %v68_v7 = vadd.s32 24, %v1511_v2 }
  0x3b   :  { %v69_v9 = vadd.s32 32, %v1511_v2  ;;  %v70_v10 = vadd.s32 40, %v1511_v2  ;;  %v71_v35 = vadd.s32 48, %v1511_v2  ;;  %v72_v42 = vadd.s32 56, %v1511_v2  ;;  %p1408_p13 = por %p1407_p12, %p1406_p11 }
  0x3c   :  { %v105_v11 = vmul.u32 128, %v66_v4  ;;  %v120_v12 = vadd.s32 %v104_v5, %v1513_v3  ;;  %v106_v13 = vmul.u32 128, %v67_v6 }
  0x3d   :  { %v107_v14 = vmul.u32 128, %v68_v7  ;;  %v108_v15 = vmul.u32 128, %v69_v9  ;;  %p1409_p0 = pnand %p1408_p13, %p1402_p10 }
  0x3e   :  { %v121_v16 = vadd.s32 %v105_v11, %v1513_v3  ;;  %v138_v17 = vxor.u32 %v1522_v8, %v120_v12  ;;  %v122_v18 = vadd.s32 %v106_v13, %v1513_v3  ;;  %v109_v20 = vmul.u32 128, %v70_v10 }
  0x3f   :  { %v123_v19 = vadd.s32 %v107_v14, %v1513_v3  ;;  %v124_v21 = vadd.s32 %v108_v15, %v1513_v3  ;;  %v110_v49 = vmul.u32 128, %v71_v35  ;;  %v111_v56 = vmul.u32 128, %v72_v42 }
  0x40   :  { %v139_v22 = vxor.u32 %v1522_v8, %v121_v16  ;;  %v1057_v23 = vshrl.u32 %v138_v17, 16  ;;  %v140_v24 = vxor.u32 %v1522_v8, %v122_v18  ;;  %v125_v29 = vadd.s32 %v109_v20, %v1513_v3 }
  0x41   :  { %v141_v25 = vxor.u32 %v1522_v8, %v123_v19  ;;  %v142_v31 = vxor.u32 %v1522_v8, %v124_v21  ;;  %v126_v60 = vadd.s32 %v110_v49, %v1513_v3  ;;  %v127_v0 = vadd.s32 %v111_v56, %v1513_v3 }
  0x42   :  { %v1058_v26 = vshrl.u32 %v139_v22, 16  ;;  %v186_v27 = vxor.u32 %v1057_v23, %v138_v17  ;;  %v1059_v28 = vshrl.u32 %v140_v24, 16  ;;  %v143_v37 = vxor.u32 %v1522_v8, %v125_v29 }
  0x43   :  { %v1060_v30 = vshrl.u32 %v141_v25, 16  ;;  %v1061_v38 = vshrl.u32 %v142_v31, 16  ;;  %v144_v7 = vxor.u32 %v1522_v8, %v126_v60  ;;  %v145_v12 = vxor.u32 %v1522_v8, %v127_v0 }
  0x44   :  { %v187_v32 = vxor.u32 %v1058_v26, %v139_v22  ;;  %v202_v33 = vmul.u32 569420461, %v186_v27  ;;  %v188_v34 = vxor.u32 %v1059_v28, %v140_v24  ;;  %v1062_v44 = vshrl.u32 %v143_v37, 16 }
  0x45   :  { %v189_v36 = vxor.u32 %v1060_v30, %v141_v25  ;;  %v190_v45 = vxor.u32 %v1061_v38, %v142_v31  ;;  %v1063_v16 = vshrl.u32 %v144_v7, 16  ;;  %v1064_v20 = vshrl.u32 %v145_v12, 16 }
  0x46   :  { %v203_v39 = vmul.u32 569420461, %v187_v32  ;;  %v1073_v40 = vshrl.u32 %v202_v33, 15  ;;  %v204_v41 = vmul.u32 569420461, %v188_v34  ;;  %v191_v51 = vxor.u32 %v1062_v44, %v143_v37 }
  0x47   :  { %v205_v43 = vmul.u32 569420461, %v189_v36  ;;  %v206_v52 = vmul.u32 569420461, %v190_v45  ;;  %v192_v24 = vxor.u32 %v1063_v16, %v144_v7  ;;  %v193_v28 = vxor.u32 %v1064_v20, %v145_v12  ;;  %v876_v16 = vld [vmem:[#allocation10 + $0x10] sm:$0xff]  ;;  %v877_v20 = vld [vmem:[#allocation10 + $0x18] sm:$0xff] }
  0x48   :  { %v1074_v46 = vshrl.u32 %v203_v39, 15  ;;  %v250_v47 = vxor.u32 %v1073_v40, %v202_v33  ;;  %v1075_v48 = vshrl.u32 %v204_v41, 15  ;;  %v207_v58 = vmul.u32 569420461, %v191_v51 }
  0x49   :  { %v1076_v50 = vshrl.u32 %v205_v43, 15  ;;  %v1077_v59 = vshrl.u32 %v206_v52, 15  ;;  %v208_v32 = vmul.u32 569420461, %v192_v24  ;;  %v209_v36 = vmul.u32 569420461, %v193_v28 }
  0x4a   :  { %v251_v53 = vxor.u32 %v1074_v46, %v203_v39  ;;  %v266_v54 = vmul.u32 1935289751, %v250_v47  ;;  %v252_v55 = vxor.u32 %v1075_v48, %v204_v41  ;;  %v1078_v5 = vshrl.u32 %v207_v58, 15 }
  0x4b   :  { %v253_v57 = vxor.u32 %v1076_v50, %v205_v43  ;;  %v254_v6 = vxor.u32 %v1077_v59, %v206_v52  ;;  %v1079_v40 = vshrl.u32 %v208_v32, 15  ;;  %v1080_v44 = vshrl.u32 %v209_v36, 15 }
  0x4c   :  { %v267_v61 = vmul.u32 1935289751, %v251_v53  ;;  %v1089_v62 = vshrl.u32 %v266_v54, 15  ;;  %v268_v63 = vmul.u32 1935289751, %v252_v55  ;;  %v255_v14 = vxor.u32 %v1078_v5, %v207_v58 }
  0x4d   :  { %v269_v4 = vmul.u32 1935289751, %v253_v57  ;;  %v270_v15 = vmul.u32 1935289751, %v254_v6  ;;  %v256_v51 = vxor.u32 %v1079_v40, %v208_v32  ;;  %v257_v55 = vxor.u32 %v1080_v44, %v209_v36 }
  0x4e   :  { %v1090_v9 = vshrl.u32 %v267_v61, 15  ;;  %v314_v10 = vxor.u32 %v1089_v62, %v266_v54  ;;  %v1091_v11 = vshrl.u32 %v268_v63, 15  ;;  %v271_v22 = vmul.u32 1935289751, %v255_v14 }
  0x4f   :  { %v1092_v13 = vshrl.u32 %v269_v4, 15  ;;  %v1093_v23 = vshrl.u32 %v270_v15, 15  ;;  %v272_v7 = vmul.u32 1935289751, %v256_v51  ;;  %v74_v12 = vadd.s32 72, %v1511_v2 }
  0x50   :  { %v315_v17 = vxor.u32 %v1090_v9, %v267_v61  ;;  %v1105_v18 = vshrl.u32 %v314_v10, 8  ;;  %v316_v19 = vxor.u32 %v1091_v11, %v268_v63  ;;  %v1094_v30 = vshrl.u32 %v271_v22, 15  ;;  %v875_v10 = vld [vmem:[#allocation10 + $0x8] sm:$0xff] }
  0x51   :  { %v317_v21 = vxor.u32 %v1092_v13, %v269_v4  ;;  %v318_v31 = vxor.u32 %v1093_v23, %v270_v15  ;;  %v73_v61 = vadd.s32 64, %v1511_v2  ;;  %v874_v4 = vld [vmem:[#allocation10] sm:$0xff]  ;;  %v273_v9 = vmul.u32 1935289751, %v257_v55 }
  0x52   :  { %v1106_v25 = vshrl.u32 %v315_v17, 8  ;;  %v362_v26 = vcvt.s32.f32 %v1105_v18  ;;  %v1107_v27 = vshrl.u32 %v316_v19, 8  ;;  %v319_v38 = vxor.u32 %v1094_v30, %v271_v22 }
  0x53   :  { %v1108_v29 = vshrl.u32 %v317_v21, 8  ;;  %v1109_v39 = vshrl.u32 %v318_v31, 8  ;;  %v1095_v14 = vshrl.u32 %v272_v7, 15  ;;  %v890_v15 = vmul.f32 1.442695, %v874_v4 }
  0x54   :  { %v363_v33 = vcvt.s32.f32 %v1106_v25  ;;  %v378_v34 = vadd.f32 0.5, %v362_v26  ;;  %v364_v35 = vcvt.s32.f32 %v1107_v27  ;;  %v1110_v46 = vshrl.u32 %v319_v38, 8  ;;  %v878_v27 = vld [vmem:[#allocation10 + $0x20] sm:$0xff] }
  0x55   :  { %v365_v37 = vcvt.s32.f32 %v1108_v29  ;;  %v366_v47 = vcvt.s32.f32 %v1109_v39  ;;  %v1096_v18 = vshrl.u32 %v273_v9, 15  ;;  %v892_v19 = vmul.f32 1.442695, %v875_v10 }
  0x56   :  { %v379_v41 = vadd.f32 0.5, %v363_v33  ;;  %v1544_v42 = vmul.f32 5.9604645e-08, %v378_v34  ;;  %v380_v43 = vadd.f32 0.5, %v364_v35  ;;  %v367_v53 = vcvt.s32.f32 %v1110_v46 }
  0x57   :  { %v381_v45 = vadd.f32 0.5, %v365_v37  ;;  %v382_v54 = vadd.f32 0.5, %v366_v47  ;;  %v320_v22 = vxor.u32 %v1095_v14, %v272_v7  ;;  %v112_v23 = vmul.u32 128, %v73_v61 }
  0x58   :  { %v1546_v48 = vmul.f32 5.9604645e-08, %v379_v41  ;;  %v410_v49 = vsub.f32 1.0, %v1544_v42  ;;  %v1549_v50 = vmul.f32 5.9604645e-08, %v380_v43  ;;  %v383_v60 = vadd.f32 0.5, %v367_v53  ;;  %v879_v43 = vld [vmem:[#allocation10 + $0x28] sm:$0xff] }
  0x59   :  { %v1551_v52 = vmul.f32 5.9604645e-08, %v381_v45  ;;  %v1560_v0 = vmul.f32 5.9604645e-08, %v382_v54  ;;  %v321_v24 = vxor.u32 %v1096_v18, %v273_v9  ;;  %v113_v25 = vmul.u32 128, %v74_v12  ;;  %v880_v9 = vld [vmem:[#allocation10 + $0x30] sm:$0xff] }
  0x5a   :  { %v411_v56 = vsub.f32 1.0, %v1546_v48  ;;  %v426_v57 = vmin.f32 %v1544_v42, %v410_v49  ;;  %v412_v58 = vsub.f32 1.0, %v1549_v50  ;;  %v1563_v6 = vmul.f32 5.9604645e-08, %v383_v60 }
  0x5b   :  { %v413_v59 = vsub.f32 1.0, %v1551_v52  ;;  %v414_v11 = vsub.f32 1.0, %v1560_v0  ;;  %v894_v26 = vmul.f32 1.442695, %v876_v16  ;;  %v1111_v28 = vshrl.u32 %v320_v22, 8 }
  0x5c   :  { %v427_v62 = vmin.f32 %v1546_v48, %v411_v56  ;;  %1207 = vlog2.f32 %v426_v57  ;;  %v428_v63 = vmin.f32 %v1549_v50, %v412_v58  ;;  %v415_v13 = vsub.f32 1.0, %v1563_v6 }
  0x5d   :  { %v429_v5 = vmin.f32 %v1551_v52, %v413_v59  ;;  %v430_v17 = vmin.f32 %v1560_v0, %v414_v11  ;;  %v128_v29 = vadd.s32 %v112_v23, %v1513_v3  ;;  %v896_v30 = vmul.f32 1.442695, %v877_v20 }
  0x5e   :  { %1209 = vlog2.f32 %v427_v62  ;;  %v431_v21 = vmin.f32 %v1563_v6, %v415_v13  ;;  %v1112_v31 = vshrl.u32 %v321_v24, 8  ;;  %v129_v32 = vadd.s32 %v113_v25, %v1513_v3 }
  0x5f   :  { %1211 = vlog2.f32 %v428_v63  ;;  %v368_v33 = vcvt.s32.f32 %v1111_v28  ;;  %v75_v34 = vadd.s32 80, %v1511_v2  ;;  %v898_v36 = vmul.f32 1.442695, %v878_v27 }
  0x60   :  { %1213 = vlog2.f32 %v429_v5  ;;  %v369_v37 = vcvt.s32.f32 %v1112_v31  ;;  %v146_v38 = vxor.u32 %v1522_v8, %v128_v29  ;;  %v147_v39 = vxor.u32 %v1522_v8, %v129_v32 }
  0x61   :  { %1215 = vlog2.f32 %v430_v17  ;;  %v384_v44 = vadd.f32 0.5, %v368_v33  ;;  %v76_v45 = vadd.s32 88, %v1511_v2  ;;  %v114_v53 = vmul.u32 128, %v75_v34 }
  0x62   :  { %1217 = vlog2.f32 %v431_v21  ;;  %v385_v51 = vadd.f32 0.5, %v369_v37  ;;  %v1065_v56 = vshrl.u32 %v146_v38, 16  ;;  %v1066_v57 = vshrl.u32 %v147_v39, 16 }
  0x63   :  { %1219 = vpow2.f32 %v890_v15  ;;  %v900_v59 = vmul.f32 1.442695, %v879_v43  ;;  %v1583_v63 = vmul.f32 5.9604645e-08, %v384_v44  ;;  %v115_v4 = vmul.u32 128, %v76_v45 }
  0x64   :  { %1221 = vpow2.f32 %v892_v19  ;;  %v1586_v7 = vmul.f32 5.9604645e-08, %v385_v51  ;;  %v130_v10 = vadd.s32 %v114_v53, %v1513_v3  ;;  %v194_v13 = vxor.u32 %v1065_v56, %v146_v38 }
  0x65   :  { %1223 = vpow2.f32 %v894_v26  ;;  %v195_v14 = vxor.u32 %v1066_v57, %v147_v39  ;;  %v416_v18 = vsub.f32 1.0, %v1583_v63  ;;  %v1598_v19 = vmul.f32 1.442695, %v880_v9 }
  0x66   :  { %v1208_v35 = vpop.eup %1207  ;;  %1225 = vpow2.f32 %v896_v30  ;;  %v131_v20 = vadd.s32 %v115_v4, %v1513_v3  ;;  %v417_v23 = vsub.f32 1.0, %v1586_v7  ;;  %v1608_v24 = vxor.u32 %v1522_v8, %v130_v10 }
  0x67   :  { %v443_v40 = vmul.f32 0.6931472, %v1208_v35  ;;  %1227 = vpow2.f32 %v898_v36  ;;  %v210_v27 = vmul.u32 569420461, %v194_v13  ;;  %v211_v28 = vmul.u32 569420461, %v195_v14 }
  0x68   :  { %v1210_v41 = vpop.eup %1209  ;;  %v432_v33 = vmin.f32 %v1583_v63, %v416_v18  ;;  %v433_v35 = vmin.f32 %v1586_v7, %v417_v23  ;;  %v149_v44 = vxor.u32 %v1522_v8, %v131_v20  ;;  %v1067_v56 = vshrl.u32 %v1608_v24, 16 }
  0x69   :  { %v1212_v46 = vpop.eup %1211  ;;  %v445_v47 = vmul.f32 0.6931472, %v1210_v41  ;;  %v1576_v49 = vmul.f32 -2.0, %v443_v40  ;;  %v1081_v36 = vshrl.u32 %v210_v27, 15  ;;  %v1082_v39 = vshrl.u32 %v211_v28, 15 }
  0x6a   :  { %v1214_v54 = vpop.eup %1213  ;;  %v447_v55 = vmul.f32 0.6931472, %v1212_v46  ;;  %v1068_v10 = vshrl.u32 %v149_v44, 16  ;;  %vm810_vm12 = vcmp.lt.f32.partialorder %v1544_v42, 0.5  ;;  %vm811_vm13 = vcmp.lt.f32.partialorder %v1546_v48, 0.5  ;;  %v860_v48 = vld [vmem:[#allocation8 + $0x10] sm:$0xff] }
  0x6b   :  { %v1578_v58 = vmul.f32 -2.0, %v445_v47  ;;  %1229 = vrsqrt.f32 %v1576_v49  ;;  %v1216_v60 = vpop.eup %1215  ;;  %v449_v61 = vmul.f32 0.6931472, %v1214_v54  ;;  %vm492_vm0 = vcmp.eq.f32.partialorder %v1576_v49, inf }
  0x6c   :  { %v1581_v62 = vmul.f32 -2.0, %v447_v55  ;;  %v1218_v5 = vpop.eup %1217  ;;  %v451_v16 = vmul.f32 0.6931472, %v1216_v60  ;;  %vm494_vm1 = vcmp.eq.f32.partialorder %v1576_v49, 0.0  ;;  %v495_v26 = vand.u32 2147483648, %v1576_v49 }
  0x6d   :  { %1231 = vrsqrt.f32 %v1578_v58  ;;  %v1589_v11 = vpop.eup %1219  ;;  %v1591_v12 = vmul.f32 -2.0, %v449_v61  ;;  %v453_v17 = vmul.f32 0.6931472, %v1218_v5  ;;  %vm499_vm2 = vcmp.eq.f32.partialorder %v1578_v58, inf }
  0x6e   :  { %1233 = vrsqrt.f32 %v1581_v62  ;;  %v1594_v15 = vpop.eup %1221  ;;  %v1604_v22 = vmul.f32 -2.0, %v451_v16  ;;  %vm501_vm3 = vcmp.eq.f32.partialorder %v1578_v58, 0.0  ;;  %v502_v29 = vand.u32 2147483648, %v1578_v58 }
  0x6f   :  { %1235 = vpow2.f32 %v900_v59  ;;  %v1601_v21 = vpop.eup %1223  ;;  %v1617_v30 = vmul.f32 -2.0, %v453_v17  ;;  %vm506_vm4 = vcmp.eq.f32.partialorder %v1581_v62, inf  ;;  %vm508_vm5 = vcmp.eq.f32.partialorder %v1581_v62, 0.0 }
  0x70   :  { %1237 = vrsqrt.f32 %v1591_v12  ;;  %v1610_v25 = vpop.eup %1225  ;;  %v509_v32 = vand.u32 2147483648, %v1581_v62  ;;  %vm513_vm6 = vcmp.eq.f32.partialorder %v1591_v12, inf  ;;  %vm515_vm7 = vcmp.eq.f32.partialorder %v1591_v12, 0.0 }
  0x71   :  { %v1619_v31 = vpop.eup %1227  ;;  %1239 = vrsqrt.f32 %v1604_v22  ;;  %v516_v38 = vand.u32 2147483648, %v1591_v12  ;;  %v523_v41 = vand.u32 2147483648, %v1604_v22  ;;  %v530_v43 = vand.u32 2147483648, %v1617_v30 }
  0x72   :  { %1241 = vrsqrt.f32 %v1617_v30  ;;  %v1639_v51 = vxor.u32 %v1081_v36, %v210_v27  ;;  %vm520_vm8 = vcmp.eq.f32.partialorder %v1604_v22, inf  ;;  %vm522_vm9 = vcmp.eq.f32.partialorder %v1604_v22, 0.0 }
  0x73   :  { %1243 = vlog2.f32 %v432_v33  ;;  %vm527_vm10 = vcmp.eq.f32.partialorder %v1617_v30, inf  ;;  %vm529_vm11 = vcmp.eq.f32.partialorder %v1617_v30, 0.0  ;;  %vm812_vm14 = vcmp.lt.f32.partialorder %v1549_v50, 0.5 }
  0x74   :  { %1245 = vlog2.f32 %v433_v35 }
  0x75   :  { %v1230_v34 = vpop.eup %1229 }
  0x76   :  { %v491_v37 = vmul.f32 %v1230_v34, %v1576_v49 }
  0x77   :  { %v1232_v40 = vpop.eup %1231 }
  0x78   :  { %v1234_v45 = vpop.eup %1233  ;;  %v493_v46 = vsel %vm492_vm0, %v1576_v49, %v491_v37  ;;  %v498_v47 = vmul.f32 %v1232_v40, %v1578_v58  ;;  %v1656_v49 = vxor.u32 %v1082_v39, %v211_v28  ;;  %v1685_v28 = vxor.u32 %v1067_v56, %v1608_v24 }
  0x79   :  { %v1641_v53 = vpop.eup %1235  ;;  %v1645_v54 = vsel %vm494_vm1, %v495_v26, %v493_v46  ;;  %v505_v55 = vmul.f32 %v1234_v45, %v1581_v62  ;;  %v1694_v46 = vxor.u32 %v1068_v10, %v149_v44  ;;  %vm813_vm0 = vcmp.lt.f32.partialorder %v1551_v52, 0.5 }
  0x7a   :  { %v1238_v57 = vpop.eup %1237  ;;  %v500_v59 = vsel %vm499_vm2, %v1578_v58, %v498_v47  ;;  %v602_v60 = vmul.f32 0.010328, %v1645_v54  ;;  %v666_v61 = vmul.f32 0.001308, %v1645_v54  ;;  %v274_v58 = vmul.u32 1935289751, %v1639_v51 }
  0x7b   :  { %v1660_v4 = vsel %vm501_vm3, %v502_v29, %v500_v59  ;;  %v507_v5 = vsel %vm506_vm4, %v1581_v62, %v505_v55  ;;  %v512_v9 = vmul.f32 %v1238_v57, %v1591_v12  ;;  %v1240_v29 = vpop.eup %1239  ;;  %v275_v39 = vmul.u32 1935289751, %v1656_v49 }
  0x7c   :  { %v603_v13 = vmul.f32 0.010328, %v1660_v4  ;;  %v667_v14 = vmul.f32 0.001308, %v1660_v4  ;;  %v1671_v16 = vsel %vm508_vm5, %v509_v32, %v507_v5  ;;  %v682_v17 = vadd.f32 0.189269, %v666_v61 }
  0x7d   :  { %v514_v18 = vsel %vm513_vm6, %v1591_v12, %v512_v9  ;;  %v604_v20 = vmul.f32 0.010328, %v1671_v16  ;;  %v668_v23 = vmul.f32 0.001308, %v1671_v16  ;;  %v618_v26 = vadd.f32 0.802853, %v602_v60 }
  0x7e   :  { %v683_v27 = vadd.f32 0.189269, %v667_v14  ;;  %v1682_v62 = vsel %vm515_vm7, %v516_v38, %v514_v18  ;;  %v619_v32 = vadd.f32 0.802853, %v603_v13  ;;  %v698_v33 = vmul.f32 %v682_v17, %v1645_v54  ;;  %v1242_v38 = vpop.eup %1241 }
  0x7f   :  { %v605_v34 = vmul.f32 0.010328, %v1682_v62  ;;  %v669_v35 = vmul.f32 0.001308, %v1682_v62  ;;  %v684_v37 = vadd.f32 0.189269, %v668_v23  ;;  %v1244_v47 = vpop.eup %1243  ;;  %v634_v55 = vmul.f32 %v618_v26, %v1645_v54 }
  0x80   :  { %v699_v36 = vmul.f32 %v683_v27, %v1660_v4  ;;  %v1097_v12 = vshrl.u32 %v274_v58, 15  ;;  %v714_v40 = vadd.f32 1.432788, %v698_v33  ;;  %v620_v24 = vadd.f32 0.802853, %v604_v20  ;;  %v1246_v60 = vpop.eup %1245 }
  0x81   :  { %v685_v45 = vadd.f32 0.189269, %v669_v35  ;;  %v700_v57 = vmul.f32 %v684_v37, %v1671_v16  ;;  %v519_v59 = vmul.f32 %v1240_v29, %v1604_v22  ;;  %v635_v61 = vmul.f32 %v619_v32, %v1660_v4 }
  0x82   :  { %v715_v56 = vadd.f32 1.432788, %v699_v36  ;;  %v730_v49 = vmul.f32 %v714_v40, %v1645_v54  ;;  %v621_v5 = vadd.f32 0.802853, %v605_v34  ;;  %v526_v14 = vmul.f32 %v1242_v38, %v1617_v30 }
  0x83   :  { %v701_v9 = vmul.f32 %v685_v45, %v1682_v62  ;;  %v716_v44 = vadd.f32 1.432788, %v700_v57  ;;  %v521_v10 = vsel %vm520_vm8, %v1604_v22, %v519_v59  ;;  %v636_v18 = vmul.f32 %v620_v24, %v1671_v16 }
  0x84   :  { %v731_v13 = vmul.f32 %v715_v56, %v1660_v4  ;;  %v746_v17 = vadd.f32 1.0, %v730_v49  ;;  %v1712_v23 = vsel %vm522_vm9, %v523_v41, %v521_v10  ;;  %v528_v29 = vsel %vm527_vm10, %v1617_v30, %v526_v14 }
  0x85   :  { %v717_v20 = vadd.f32 1.432788, %v701_v9  ;;  %v732_v27 = vmul.f32 %v716_v44, %v1671_v16  ;;  %v606_v32 = vmul.f32 0.010328, %v1712_v23  ;;  %v1724_v34 = vsel %vm529_vm11, %v530_v43, %v528_v29 }
  0x86   :  { %v747_v26 = vadd.f32 1.0, %v731_v13  ;;  %1247 = vrcp.f32 %v746_v17  ;;  %v670_v22 = vmul.f32 0.001308, %v1712_v23  ;;  %v607_v35 = vmul.f32 0.010328, %v1724_v34 }
  0x87   :  { %v733_v33 = vmul.f32 %v717_v20, %v1682_v62  ;;  %v748_v41 = vadd.f32 1.0, %v732_v27  ;;  %v622_v36 = vadd.f32 0.802853, %v606_v32  ;;  %v671_v38 = vmul.f32 0.001308, %v1724_v34 }
  0x88   :  { %1249 = vrcp.f32 %v747_v26  ;;  %v686_v40 = vadd.f32 0.189269, %v670_v22  ;;  %v1098_v24 = vshrl.u32 %v275_v39, 15  ;;  %v637_v45 = vmul.f32 %v621_v5, %v1682_v62 }
  0x89   :  { %v749_v37 = vadd.f32 1.0, %v733_v33  ;;  %1251 = vrcp.f32 %v748_v41  ;;  %v623_v56 = vadd.f32 0.802853, %v607_v35  ;;  %v455_v57 = vmul.f32 0.6931472, %v1244_v47 }
  0x8a   :  { %v687_v30 = vadd.f32 0.189269, %v671_v38  ;;  %v702_v43 = vmul.f32 %v686_v40, %v1712_v23  ;;  %v457_v59 = vmul.f32 0.6931472, %v1246_v60  ;;  %v638_v49 = vmul.f32 %v622_v36, %v1712_v23 }
  0x8b   :  { %1253 = vrcp.f32 %v749_v37  ;;  %v639_v9 = vmul.f32 %v623_v56, %v1724_v34  ;;  %v1733_v13 = vmul.f32 -2.0, %v455_v57  ;;  %v322_v44 = vxor.u32 %v1097_v12, %v274_v58 }
  0x8c   :  { %v703_v5 = vmul.f32 %v687_v30, %v1724_v34  ;;  %v718_v10 = vadd.f32 1.432788, %v702_v43  ;;  %v1739_v47 = vmul.f32 -2.0, %v457_v59  ;;  %v323_v14 = vxor.u32 %v1098_v24, %v275_v39 }
  0x8d   :  { %v650_v17 = vadd.f32 2.515517, %v634_v55  ;;  %v651_v20 = vadd.f32 2.515517, %v635_v61  ;;  %v652_v60 = vadd.f32 2.515517, %v636_v18  ;;  %1255 = vrsqrt.f32 %v1733_v13 }
  0x8e   :  { %v653_v26 = vadd.f32 2.515517, %v637_v45  ;;  %v719_v27 = vadd.f32 1.432788, %v703_v5  ;;  %v734_v51 = vmul.f32 %v718_v10, %v1712_v23  ;;  %1257 = vrsqrt.f32 %v1739_v47 }
  0x8f   :  { %v1746_v58 = vadd.f32 2.515517, %v638_v49  ;;  %v1748_v12 = vadd.f32 2.515517, %v639_v9  ;;  %vm534_vm15 = vcmp.eq.f32.partialorder %v1733_v13, inf  ;;  %v1113_v39 = vshrl.u32 %v322_v44, 8 }
  0x90   :  { %v1248_v55 = vpop.eup %1247  ;;  %v735_v61 = vmul.f32 %v719_v27, %v1724_v34  ;;  %v750_v18 = vadd.f32 1.0, %v734_v51  ;;  %vm536_vm1 = vcmp.eq.f32.partialorder %v1733_v13, 0.0  ;;  %v1114_v29 = vshrl.u32 %v323_v14, 8  ;;  %v859_v51 = vld [vmem:[#allocation8 + $0x8] sm:$0xff] }
  0x91   :  { %v763_v33 = vmul.f32 %v1248_v55, %v650_v17  ;;  %v537_v22 = vand.u32 2147483648, %v1733_v13  ;;  %vm541_vm2 = vcmp.eq.f32.partialorder %v1739_v47, inf  ;;  %v370_v41 = vcvt.s32.f32 %v1113_v39  ;;  %v858_v17 = vld [vmem:[#allocation8] sm:$0xff] }
  0x92   :  { %v1250_v32 = vpop.eup %1249  ;;  %v751_v36 = vadd.f32 1.0, %v735_v61  ;;  %1259 = vrcp.f32 %v750_v18  ;;  %v371_v37 = vcvt.s32.f32 %v1114_v29  ;;  %vm543_vm3 = vcmp.eq.f32.partialorder %v1739_v47, 0.0 }
  0x93   :  { %v765_v35 = vmul.f32 %v1250_v32, %v651_v20  ;;  %v1252_v38 = vpop.eup %1251  ;;  %v794_v40 = vsub.f32 %v1645_v54, %v763_v33  ;;  %v386_v24 = vadd.f32 0.5, %v370_v41  ;;  %v212_v45 = vmul.u32 569420461, %v1685_v28 }
  0x94   :  { %v767_v30 = vmul.f32 %v1252_v38, %v652_v60  ;;  %1261 = vrcp.f32 %v751_v36  ;;  %v387_v43 = vadd.f32 0.5, %v371_v37  ;;  %v213_v44 = vmul.u32 569420461, %v1694_v46 }
  0x95   :  { %v1254_v56 = vpop.eup %1253  ;;  %v795_v57 = vsub.f32 %v1660_v4, %v765_v35  ;;  %v826_v59 = vsub.f32 0.0, %v794_v40  ;;  %v1760_v9 = vmul.f32 5.9604645e-08, %v386_v24  ;;  %v544_v10 = vand.u32 2147483648, %v1739_v47 }
  0x96   :  { %v769_v49 = vmul.f32 %v1254_v56, %v653_v26  ;;  %v796_v54 = vsub.f32 %v1671_v16, %v767_v30  ;;  %v1765_v14 = vmul.f32 5.9604645e-08, %v387_v43  ;;  %v1083_v26 = vshrl.u32 %v212_v45, 15 }
  0x97   :  { %v827_v5 = vsub.f32 0.0, %v795_v57  ;;  %v1256_v28 = vpop.eup %1255  ;;  %v842_v4 = vsel %vm810_vm12, %v826_v59, %v794_v40  ;;  %v418_v60 = vsub.f32 1.0, %v1760_v9  ;;  %vm814_vm4 = vcmp.lt.f32.partialorder %v1560_v0, 0.5 }
  0x98   :  { %v797_v20 = vsub.f32 %v1682_v62, %v769_v49  ;;  %v1258_v27 = vpop.eup %1257  ;;  %v922_v16 = vmul.f32 %v1589_v11, %v842_v4  ;;  %v828_v39 = vsub.f32 0.0, %v796_v54  ;;  %v533_v55 = vmul.f32 %v1256_v28, %v1733_v13 }
  0x99   :  { %v843_v46 = vsel %vm811_vm13, %v827_v5, %v795_v57  ;;  %v540_v62 = vmul.f32 %v1258_v27, %v1739_v47  ;;  %v1084_v18 = vshrl.u32 %v213_v44, 15  ;;  %v419_v33 = vsub.f32 1.0, %v1765_v14 }
  0x9a   :  { %v923_v42 = vmul.f32 %v1594_v15, %v843_v46  ;;  %v829_v61 = vsub.f32 0.0, %v797_v20  ;;  %v938_v29 = vadd.f32 %v922_v16, %v858_v17  ;;  %v844_v32 = vsel %vm812_vm14, %v828_v39, %v796_v54  ;;  %v861_v15 = vld [vmem:[#allocation8 + $0x18] sm:$0xff]  ;;  %v863_v16 = vld [vmem:[#allocation8 + $0x28] sm:$0xff] }
  0x9b   :  { %v535_v11 = vsel %vm534_vm15, %v1733_v13, %v533_v55  ;;  %v924_v36 = vmul.f32 %v1601_v21, %v844_v32  ;;  %v542_v40 = vsel %vm541_vm2, %v1739_v47, %v540_v62  ;;  %v434_v56 = vmin.f32 %v1760_v9, %v418_v60  ;;  %v862_v60 = vld [vmem:[#allocation8 + $0x20] sm:$0xff]  ;;  %v881_v32 = vld [vmem:[#allocation10 + $0x38] sm:$0xff] }
  0x9c   :  { %v939_v41 = vadd.f32 %v923_v42, %v859_v51  ;;  %v845_v35 = vsel %vm813_vm0, %v829_v61, %v797_v20  ;;  %v1789_v37 = vsel %vm536_vm1, %v537_v22, %v535_v11  ;;  %v1260_v50 = vpop.eup %1259  ;;  %v1800_v21 = vsel %vm543_vm3, %v544_v10, %v542_v40 }
  0x9d   :  { %v925_v38 = vmul.f32 %v1610_v25, %v845_v35  ;;  %v672_v24 = vmul.f32 0.001308, %v1789_v37  ;;  %v940_v57 = vadd.f32 %v924_v36, %v860_v48  ;;  %v771_v30 = vmul.f32 %v1260_v50, %v1746_v58 }
  0x9e   :  { %v1175_v52 = vpack.c.bf16 %v939_v41, %v938_v29  ;;  %v1262_v13 = vpop.eup %1261  ;;  %v673_v25 = vmul.f32 0.001308, %v1800_v21  ;;  %1263 = vpow2.f32 %v1598_v19  ;;  %v260_v43 = vxor.u32 %v1083_v26, %v212_v45 }
  0x9f   :  { %v941_v22 = vadd.f32 %v925_v38, %v861_v15  ;;  %v773_v59 = vmul.f32 %v1262_v13, %v1748_v12  ;;  %v798_v49 = vsub.f32 %v1712_v23, %v771_v30  ;;  %v688_v5 = vadd.f32 0.189269, %v672_v24 }
  0xa0   :  { %1176 = vmatpush3.bf16.msra.mxu0 %v1175_v52  ;;  %v435_v54 = vmin.f32 %v1765_v14, %v419_v33  ;;  %v608_v58 = vmul.f32 0.010328, %v1789_v37  ;;  %v689_v10 = vadd.f32 0.189269, %v673_v25  ;;  %v261_v28 = vxor.u32 %v1084_v18, %v213_v44 }
  0xa1   :  { %1177 = vmatprep.subr.bf16.mxu0 %v1434_v1  ;;  %v1178_v47 = vpack.c.bf16 %v941_v22, %v940_v57  ;;  %v799_v4 = vsub.f32 %v1724_v34, %v773_v59  ;;  %v830_v17 = vsub.f32 0.0, %v798_v49  ;;  %v704_v19 = vmul.f32 %v688_v5, %v1789_v37 }
  0xa2   :  { %1265 = vlog2.f32 %v434_v56  ;;  %vm815_vm5 = vcmp.lt.f32.partialorder %v1563_v6, 0.5  ;;  %v705_v23 = vmul.f32 %v689_v10, %v1800_v21  ;;  %v77_v12 = vadd.s32 96, %v1511_v2 }
  0xa3   :  { %1267 = vlog2.f32 %v435_v54  ;;  %v831_v45 = vsub.f32 0.0, %v799_v4  ;;  %v846_v20 = vsel %vm814_vm4, %v830_v17, %v798_v49  ;;  %v609_v44 = vmul.f32 0.010328, %v1800_v21 }
  0xa4   :  { %1179 = vmatpush3.bf16.msra.mxu0 %v1178_v47  ;;  %v720_v34 = vadd.f32 1.432788, %v704_v19  ;;  %v926_v26 = vmul.f32 %v1619_v31, %v846_v20  ;;  %v624_v27 = vadd.f32 0.802853, %v608_v58  ;;  %v721_v6 = vadd.f32 1.432788, %v705_v23 }
  0xa5   :  { %1180 = vmatprep.subr.bf16.mxu0 %v1434_v1  ;;  %v276_v46 = vmul.u32 1935289751, %v260_v43  ;;  %v847_v51 = vsel %vm815_vm5, %v831_v45, %v799_v4  ;;  %v277_v55 = vmul.u32 1935289751, %v261_v28  ;;  %v78_v42 = vadd.s32 104, %v1511_v2 }
  0xa6   :  { %v736_v39 = vmul.f32 %v720_v34, %v1789_v37  ;;  %v927_v0 = vmul.f32 %v1641_v53, %v847_v51  ;;  %v942_v61 = vadd.f32 %v926_v26, %v862_v60  ;;  %v737_v62 = vmul.f32 %v721_v6, %v1800_v21 }
  0xa7   :  { %v1099_v18 = vshrl.u32 %v276_v46, 15  ;;  %v1100_v48 = vshrl.u32 %v277_v55, 15  ;;  %v116_v31 = vmul.u32 128, %v77_v12  ;;  %v117_v11 = vmul.u32 128, %v78_v42 }
  0xa8   :  { %v752_v29 = vadd.f32 1.0, %v736_v39  ;;  %v1823_v33 = vpop.eup %1263  ;;  %v943_v41 = vadd.f32 %v927_v0, %v863_v16  ;;  %v625_v35 = vadd.f32 0.802853, %v609_v44  ;;  %v753_v15 = vadd.f32 1.0, %v737_v62 }
  0xa9   :  { %v324_v36 = vxor.u32 %v1099_v18, %v276_v46  ;;  %v325_v50 = vxor.u32 %v1100_v48, %v277_v55  ;;  %v132_v38 = vadd.s32 %v116_v31, %v1513_v3  ;;  %v133_v53 = vadd.s32 %v117_v11, %v1513_v3 }
  0xaa   :  { %1269 = vrcp.f32 %v752_v29  ;;  %v1181_v40 = vpack.c.bf16 %v943_v41, %v942_v61  ;;  %v904_v24 = vmul.f32 1.442695, %v881_v32  ;;  %v640_v57 = vmul.f32 %v624_v27, %v1789_v37 }
  0xab   :  { %1271 = vrcp.f32 %v753_v15  ;;  %v1115_v56 = vshrl.u32 %v324_v36, 8  ;;  %v1116_v30 = vshrl.u32 %v325_v50, 8  ;;  %v150_v13 = vxor.u32 %v1522_v8, %v132_v38 }
  0xac   :  { %v1266_v52 = vpop.eup %1265  ;;  %v151_v22 = vxor.u32 %v1522_v8, %v133_v53  ;;  %1182 = vmatpush3.bf16.msra.mxu0 %v1181_v40  ;;  %v641_v43 = vmul.f32 %v625_v35, %v1800_v21  ;;  %v79_v5 = vadd.s32 112, %v1511_v2  ;;  %1273 = vpow2.f32 %v904_v24 }
  0xad   :  { %v1268_v25 = vpop.eup %1267  ;;  %v459_v59 = vmul.f32 0.6931472, %v1266_v52  ;;  %v372_v49 = vcvt.s32.f32 %v1115_v56  ;;  %1183 = vmatprep.subr.bf16.mxu0 %v1434_v1  ;;  %v373_v47 = vcvt.s32.f32 %v1116_v30  ;;  %v1069_v58 = vshrl.u32 %v150_v13, 16  ;;  %v865_v30 = vld [vmem:[#allocation8 + $0x38] sm:$0xff] }
  0xae   :  { %v461_v54 = vmul.f32 0.6931472, %v1268_v25  ;;  %v1070_v10 = vshrl.u32 %v151_v22, 16  ;;  %v80_v17 = vadd.s32 120, %v1511_v2  ;;  %v656_v20 = vadd.f32 2.515517, %v640_v57 }
  0xaf   :  { %v1833_v28 = vmul.f32 -2.0, %v459_v59  ;;  %v388_v4 = vadd.f32 0.5, %v372_v49  ;;  %v389_v23 = vadd.f32 0.5, %v373_v47  ;;  %v198_v12 = vxor.u32 %v1069_v58, %v150_v13 }
  0xb0   :  { %v1836_v19 = vmul.f32 -2.0, %v461_v54  ;;  %v199_v45 = vxor.u32 %v1070_v10, %v151_v22  ;;  %v118_v60 = vmul.u32 128, %v79_v5  ;;  %v657_v44 = vadd.f32 2.515517, %v641_v43 }
  0xb1   :  { %1275 = vrsqrt.f32 %v1833_v28  ;;  %v1840_v34 = vmul.f32 5.9604645e-08, %v388_v4  ;;  %v1842_v26 = vmul.f32 5.9604645e-08, %v389_v23  ;;  %v214_v27 = vmul.u32 569420461, %v198_v12 }
  0xb2   :  { %1277 = vrsqrt.f32 %v1836_v19  ;;  %v215_v6 = vmul.u32 569420461, %v199_v45  ;;  %vm816_vm6 = vcmp.lt.f32.partialorder %v1583_v63, 0.5  ;;  %vm817_vm7 = vcmp.lt.f32.partialorder %v1586_v7, 0.5 }
  0xb3   :  { %v119_v2 = vmul.u32 128, %v80_v17  ;;  %v420_v39 = vsub.f32 1.0, %v1840_v34  ;;  %v421_v55 = vsub.f32 1.0, %v1842_v26  ;;  %v134_v42 = vadd.s32 %v118_v60, %v1513_v3 }
  0xb4   :  { %v1270_v46 = vpop.eup %1269  ;;  %vm548_vm8 = vcmp.eq.f32.partialorder %v1833_v28, inf  ;;  %v1085_v61 = vshrl.u32 %v214_v27, 15  ;;  %v1086_v62 = vshrl.u32 %v215_v6, 15  ;;  %vm550_vm9 = vcmp.eq.f32.partialorder %v1833_v28, 0.0 }
  0xb5   :  { %v1272_v51 = vpop.eup %1271  ;;  %v775_v16 = vmul.f32 %v1270_v46, %v656_v20  ;;  %v436_v29 = vmin.f32 %v1840_v34, %v420_v39  ;;  %v437_v32 = vmin.f32 %v1842_v26, %v421_v55  ;;  %v135_v48 = vadd.s32 %v119_v2, %v1513_v3 }
  0xb6   :  { %v777_v0 = vmul.f32 %v1272_v51, %v657_v44  ;;  %v262_v11 = vxor.u32 %v1085_v61, %v214_v27  ;;  %v263_v41 = vxor.u32 %v1086_v62, %v215_v6  ;;  %v1274_v35 = vpop.eup %1273  ;;  %v551_v36 = vand.u32 2147483648, %v1833_v28 }
  0xb7   :  { %v800_v18 = vsub.f32 %v1789_v37, %v775_v16  ;;  %1279 = vlog2.f32 %v436_v29  ;;  %v152_v50 = vxor.u32 %v1522_v8, %v134_v42  ;;  %vm555_vm10 = vcmp.eq.f32.partialorder %v1836_v19, inf  ;;  %v882_v42 = vld [vmem:[#allocation10 + $0x40] sm:$0xff] }
  0xb8   :  { %v801_v31 = vsub.f32 %v1800_v21, %v777_v0  ;;  %1281 = vlog2.f32 %v437_v32  ;;  %v278_v38 = vmul.u32 1935289751, %v262_v11  ;;  %v279_v53 = vmul.u32 1935289751, %v263_v41  ;;  %v864_v21 = vld [vmem:[#allocation8 + $0x30] sm:$0xff] }
  0xb9   :  { %v832_v15 = vsub.f32 0.0, %v800_v18  ;;  %v558_v24 = vand.u32 2147483648, %v1836_v19  ;;  %v153_v56 = vxor.u32 %v1522_v8, %v135_v48  ;;  %vm557_vm11 = vcmp.eq.f32.partialorder %v1836_v19, 0.0 }
  0xba   :  { %v833_v37 = vsub.f32 0.0, %v801_v31  ;;  %v1101_v25 = vshrl.u32 %v278_v38, 15  ;;  %v1102_v59 = vshrl.u32 %v279_v53, 15  ;;  %v1071_v7 = vshrl.u32 %v152_v50, 16 }
  0xbb   :  { %v1276_v40 = vpop.eup %1275  ;;  %v848_v3 = vsel %vm816_vm6, %v832_v15, %v800_v18  ;;  %v1072_v23 = vshrl.u32 %v153_v56, 16  ;;  %vm1435_vm12 = vmmov 0   ;;  %vm818_vm1 = vcmp.lt.f32.partialorder %v1760_v9, 0.5  ;;  %v884_v9 = vld [vmem:[#allocation10 + $0x50] sm:$0xff] }
  0xbc   :  { %v1278_v52 = vpop.eup %1277  ;;  %v849_v57 = vsel %vm817_vm7, %v833_v37, %v801_v31  ;;  %v928_v13 = vmul.f32 %v1823_v33, %v848_v3  ;;  %v547_v22 = vmul.f32 %v1276_v40, %v1833_v28  ;;  %v326_v5 = vxor.u32 %v1101_v25, %v278_v38  ;;  %v883_v37 = vld [vmem:[#allocation10 + $0x48] sm:$0xff] }
  0xbd   :  { %v929_v43 = vmul.f32 %v1274_v35, %v849_v57  ;;  %v554_v63 = vmul.f32 %v1278_v52, %v1836_v19  ;;  %v327_v58 = vxor.u32 %v1102_v59, %v279_v53  ;;  %v200_v46 = vxor.u32 %v1071_v7, %v152_v50 }
  0xbe   :  { %v944_v49 = vadd.f32 %v928_v13, %v864_v21  ;;  %v549_v8 = vsel %vm548_vm8, %v1833_v28, %v547_v22  ;;  %v1117_v17 = vshrl.u32 %v326_v5, 8  ;;  %v201_v39 = vxor.u32 %v1072_v23, %v153_v56 }
  0xbf   :  { %v945_v54 = vadd.f32 %v929_v43, %v865_v30  ;;  %v1874_v33 = vsel %vm550_vm9, %v551_v36, %v549_v8  ;;  %v556_v47 = vsel %vm555_vm10, %v1836_v19, %v554_v63  ;;  %v1118_v20 = vshrl.u32 %v327_v58, 8 }
  0xc0   :  { %v1879_v10 = vsel %vm557_vm11, %v558_v24, %v556_v47  ;;  %v674_v4 = vmul.f32 0.001308, %v1874_v33  ;;  %v374_v44 = vcvt.s32.f32 %v1117_v17  ;;  %v610_v62 = vmul.f32 0.010328, %v1874_v33 }
  0xc1   :  { %v1184_v12 = vpack.c.bf16 %v945_v54, %v944_v49  ;;  %v675_v45 = vmul.f32 0.001308, %v1879_v10  ;;  %v1280_v28 = vpop.eup %1279  ;;  %v375_v6 = vcvt.s32.f32 %v1118_v20  ;;  %v611_v48 = vmul.f32 0.010328, %v1879_v10 }
  0xc2   :  { %v690_v60 = vadd.f32 0.189269, %v674_v4  ;;  %v1282_v2 = vpop.eup %1281  ;;  %v463_v51 = vmul.f32 0.6931472, %v1280_v28  ;;  %v390_v16 = vadd.f32 0.5, %v374_v44  ;;  %v1436_v59 = vmov 0.0  }
  0xc3   :  { %1185 = vmatpush3.bf16.msra.mxu0 %v1184_v12  ;;  %v691_v27 = vadd.f32 0.189269, %v675_v45  ;;  %v465_v0 = vmul.f32 0.6931472, %v1282_v2  ;;  %v391_v61 = vadd.f32 0.5, %v375_v6  ;;  %1171 = vmatprep.mubr.msk.f32.mxu0 %vm1435_vm12, %v1436_v59  ;;  %vm819_vm2 = vcmp.lt.f32.partialorder %v1765_v14, 0.5 }
  0xc4   :  { %1186 = vmatprep.subr.bf16.mxu0 %v1434_v1  ;;  %v706_v19 = vmul.f32 %v690_v60, %v1874_v33  ;;  %v484_v29 = vmul.f32 -2.0, %v463_v51  ;;  %v1887_v32 = vmul.f32 5.9604645e-08, %v390_v16  ;;  %v216_v15 = vmul.u32 569420461, %v200_v46  ;;  %v867_v14 = vld [vmem:[#allocation8 + $0x48] sm:$0xff] }
  0xc5   :  { %v707_v55 = vmul.f32 %v691_v27, %v1879_v10  ;;  %v485_v11 = vmul.f32 -2.0, %v465_v0  ;;  %v1890_v41 = vmul.f32 5.9604645e-08, %v391_v61  ;;  %v217_v36 = vmul.u32 569420461, %v201_v39 }
  0xc6   :  { %v722_v18 = vadd.f32 1.432788, %v706_v19  ;;  %1283 = vrsqrt.f32 %v484_v29  ;;  %v626_v38 = vadd.f32 0.802853, %v610_v62  ;;  %v906_v40 = vmul.f32 1.442695, %v882_v42 }
  0xc7   :  { %v723_v31 = vadd.f32 1.432788, %v707_v55  ;;  %1285 = vrsqrt.f32 %v485_v11  ;;  %v422_v3 = vsub.f32 1.0, %v1887_v32  ;;  %v627_v21 = vadd.f32 0.802853, %v611_v48 }
  0xc8   :  { %v738_v35 = vmul.f32 %v722_v18, %v1874_v33  ;;  %v423_v56 = vsub.f32 1.0, %v1890_v41  ;;  %v1087_v57 = vshrl.u32 %v216_v15, 15  ;;  %v1088_v30 = vshrl.u32 %v217_v36, 15 }
  0xc9   :  { %v739_v50 = vmul.f32 %v723_v31, %v1879_v10  ;;  %v438_v52 = vmin.f32 %v1887_v32, %v422_v3  ;;  %v908_v13 = vmul.f32 1.442695, %v883_v37  ;;  %v642_v25 = vmul.f32 %v626_v38, %v1874_v33 }
  0xca   :  { %v754_v53 = vadd.f32 1.0, %v738_v35  ;;  %v439_v22 = vmin.f32 %v1890_v41, %v423_v56  ;;  %v264_v43 = vxor.u32 %v1087_v57, %v216_v15  ;;  %v265_v63 = vxor.u32 %v1088_v30, %v217_v36 }
  0xcb   :  { %v755_v24 = vadd.f32 1.0, %v739_v50  ;;  %v643_v49 = vmul.f32 %v627_v21, %v1879_v10  ;;  %v658_v54 = vadd.f32 2.515517, %v642_v25  ;;  %vm562_vm13 = vcmp.eq.f32.partialorder %v484_v29, inf }
  0xcc   :  { %1287 = vrcp.f32 %v754_v53  ;;  %v280_v8 = vmul.u32 1935289751, %v264_v43  ;;  %v281_v5 = vmul.u32 1935289751, %v265_v63  ;;  %v565_v47 = vand.u32 2147483648, %v484_v29 }
  0xcd   :  { %1289 = vrcp.f32 %v755_v24  ;;  %vm564_vm14 = vcmp.eq.f32.partialorder %v484_v29, 0.0  ;;  %vm569_vm15 = vcmp.eq.f32.partialorder %v485_v11, inf  ;;  %v572_v23 = vand.u32 2147483648, %v485_v11 }
  0xce   :  { %1291 = vlog2.f32 %v438_v52  ;;  %v1103_v58 = vshrl.u32 %v280_v8, 15  ;;  %v659_v12 = vadd.f32 2.515517, %v643_v49  ;;  %vm571_vm0 = vcmp.eq.f32.partialorder %v485_v11, 0.0 }
  0xcf   :  { %1293 = vlog2.f32 %v439_v22  ;;  %v1104_v20 = vshrl.u32 %v281_v5, 15  ;;  %vm820_vm7 = vcmp.lt.f32.partialorder %v1840_v34, 0.5  ;;  %vm821_vm8 = vcmp.lt.f32.partialorder %v1842_v26, 0.5 }
  0xd0   :  { %1295 = vpow2.f32 %v906_v40  ;;  %v1284_v7 = vpop.eup %1283  ;;  %v328_v6 = vxor.u32 %v1103_v58, %v280_v8  ;;  %vm822_vm11 = vcmp.lt.f32.partialorder %v1887_v32, 0.5 }
  0xd1   :  { %1297 = vpow2.f32 %v908_v13  ;;  %v1286_v4 = vpop.eup %1285  ;;  %v561_v17 = vmul.f32 %v1284_v7, %v484_v29  ;;  %v329_v42 = vxor.u32 %v1104_v20, %v281_v5  ;;  %v885_v7 = vld [vmem:[#allocation10 + $0x58] sm:$0xff] }
  0xd2   :  { %v568_v45 = vmul.f32 %v1286_v4, %v485_v11  ;;  %v1119_v35 = vshrl.u32 %v328_v6, 8  ;;  %v912_v20 = vmul.f32 1.442695, %v885_v7 }
  0xd3   :  { %v563_v60 = vsel %vm562_vm13, %v484_v29, %v561_v17  ;;  %v1120_v40 = vshrl.u32 %v329_v42, 8  ;;  %v910_v17 = vmul.f32 1.442695, %v884_v9 }
  0xd4   :  { %v1900_v28 = vsel %vm564_vm14, %v565_v47, %v563_v60  ;;  %v570_v27 = vsel %vm569_vm15, %v485_v11, %v568_v45  ;;  %v376_v30 = vcvt.s32.f32 %v1119_v35  ;;  %vm823_vm14 = vcmp.lt.f32.partialorder %v1890_v41, 0.5 }
  0xd5   :  { %v1902_v19 = vsel %vm571_vm0, %v572_v23, %v570_v27  ;;  %v676_v51 = vmul.f32 0.001308, %v1900_v28  ;;  %v612_v21 = vmul.f32 0.010328, %v1900_v28 }
  0xd6   :  { %v1288_v44 = vpop.eup %1287  ;;  %v677_v55 = vmul.f32 0.001308, %v1902_v19  ;;  %v613_v22 = vmul.f32 0.010328, %v1902_v19  ;;  %v392_v47 = vadd.f32 0.5, %v376_v30 }
  0xd7   :  { %v1290_v46 = vpop.eup %1289  ;;  %v779_v2 = vmul.f32 %v1288_v44, %v658_v54  ;;  %v692_v62 = vadd.f32 0.189269, %v676_v51  ;;  %v628_v49 = vadd.f32 0.802853, %v612_v21  ;;  %v377_v54 = vcvt.s32.f32 %v1120_v40 }
  0xd8   :  { %v1292_v16 = vpop.eup %1291  ;;  %v781_v39 = vmul.f32 %v1290_v46, %v659_v12  ;;  %v693_v31 = vadd.f32 0.189269, %v677_v55  ;;  %v629_v4 = vadd.f32 0.802853, %v613_v22  ;;  %v1921_v12 = vmul.f32 5.9604645e-08, %v392_v47 }
  0xd9   :  { %v1294_v0 = vpop.eup %1293  ;;  %v802_v61 = vsub.f32 %v1874_v33, %v779_v2  ;;  %v467_v18 = vmul.f32 0.6931472, %v1292_v16  ;;  %v708_v50 = vmul.f32 %v692_v62, %v1900_v28  ;;  %v393_v23 = vadd.f32 0.5, %v377_v54 }
  0xda   :  { %v1296_v29 = vpop.eup %1295  ;;  %v803_v48 = vsub.f32 %v1879_v10, %v781_v39  ;;  %v469_v11 = vmul.f32 0.6931472, %v1294_v0  ;;  %v709_v33 = vmul.f32 %v693_v31, %v1902_v19  ;;  %v866_v10 = vld [vmem:[#allocation8 + $0x40] sm:$0xff]  ;;  %v644_v45 = vmul.f32 %v628_v49, %v1900_v28 }
  0xdb   :  { %v1298_v15 = vpop.eup %1297  ;;  %v834_v36 = vsub.f32 0.0, %v802_v61  ;;  %v486_v37 = vmul.f32 -2.0, %v467_v18  ;;  %v724_v24 = vadd.f32 1.432788, %v708_v50  ;;  %v1925_v60 = vmul.f32 5.9604645e-08, %v393_v23  ;;  %v886_v49 = vld [vmem:[#allocation10 + $0x60] sm:$0xff] }
  0xdc   :  { %v835_v38 = vsub.f32 0.0, %v803_v48  ;;  %v1912_v53 = vmul.f32 -2.0, %v469_v11  ;;  %v725_v57 = vadd.f32 1.432788, %v709_v33  ;;  %v424_v44 = vsub.f32 1.0, %v1921_v12  ;;  %v887_v23 = vld [vmem:[#allocation10 + $0x68] sm:$0xff] }
  0xdd   :  { %v850_v3 = vsel %vm818_vm1, %v834_v36, %v802_v61  ;;  %1299 = vrsqrt.f32 %v486_v37  ;;  %v740_v25 = vmul.f32 %v724_v24, %v1900_v28  ;;  %v645_v6 = vmul.f32 %v629_v4, %v1902_v19 }
  0xde   :  { %v851_v56 = vsel %vm819_vm2, %v835_v38, %v803_v48  ;;  %v930_v52 = vmul.f32 %v1296_v29, %v850_v3  ;;  %v741_v63 = vmul.f32 %v725_v57, %v1902_v19  ;;  %1301 = vrsqrt.f32 %v1912_v53 }
  0xdf   :  { %v931_v13 = vmul.f32 %v1298_v15, %v851_v56  ;;  %v756_v8 = vadd.f32 1.0, %v740_v25  ;;  %vm576_vm3 = vcmp.eq.f32.partialorder %v486_v37, inf  ;;  %v579_v46 = vand.u32 2147483648, %v486_v37 }
  0xe0   :  { %v946_v43 = vadd.f32 %v930_v52, %v866_v10  ;;  %v757_v5 = vadd.f32 1.0, %v741_v63  ;;  %vm578_vm4 = vcmp.eq.f32.partialorder %v486_v37, 0.0  ;;  %v425_v51 = vsub.f32 1.0, %v1925_v60 }
  0xe1   :  { %v947_v59 = vadd.f32 %v931_v13, %v867_v14  ;;  %1303 = vrcp.f32 %v756_v8  ;;  %v440_v16 = vmin.f32 %v1921_v12, %v424_v44  ;;  %v660_v39 = vadd.f32 2.515517, %v644_v45  ;;  %v868_v13 = vld [vmem:[#allocation8 + $0x50] sm:$0xff] }
  0xe2   :  { %1305 = vrcp.f32 %v757_v5  ;;  %vm583_vm5 = vcmp.eq.f32.partialorder %v1912_v53, inf  ;;  %v586_v0 = vand.u32 2147483648, %v1912_v53  ;;  %v441_v61 = vmin.f32 %v1925_v60, %v425_v51 }
  0xe3   :  { %v1187_v58 = vpack.c.bf16 %v947_v59, %v946_v43  ;;  %1307 = vpow2.f32 %v910_v17  ;;  %v661_v62 = vadd.f32 2.515517, %v645_v6  ;;  %vm585_vm6 = vcmp.eq.f32.partialorder %v1912_v53, 0.0 }
  0xe4   :  { %1309 = vpow2.f32 %v912_v20  ;;  %v914_v45 = vmul.f32 1.442695, %v886_v49  ;;  %v888_v49 = vld [vmem:[#allocation10 + $0x70] sm:$0xff]  ;;  %vm824_vm15 = vcmp.lt.f32.partialorder %v1921_v12, 0.5  ;;  %vm825_vm0 = vcmp.lt.f32.partialorder %v1925_v60, 0.5 }
  0xe5   :  { %1188 = vmatpush3.bf16.msra.mxu0 %v1187_v58  ;;  %1311 = vlog2.f32 %v440_v16  ;;  %v1121_v12 = vld [vmem:[%s1982_s4] ss:$0 sm:$0xff] }
  0xe6   :  { %1189 = vmatprep.subr.bf16.mxu0 %v1434_v1  ;;  %1313 = vlog2.f32 %v441_v61 }
  0xe7   :  { %v1300_v27 = vpop.eup %1299 }
  0xe8   :  { %v575_v2 = vmul.f32 %v1300_v27, %v486_v37  ;;  %v1302_v55 = vpop.eup %1301 }
  0xe9   :  { %v582_v29 = vmul.f32 %v1302_v55, %v1912_v53 }
  0xea   :  { %v577_v42 = vsel %vm576_vm3, %v486_v37, %v575_v2 }
  0xeb   :  { %v1934_v18 = vsel %vm578_vm4, %v579_v46, %v577_v42  ;;  %v1304_v31 = vpop.eup %1303  ;;  %v584_v11 = vsel %vm583_vm5, %v1912_v53, %v582_v29  ;;  %v916_v46 = vmul.f32 1.442695, %v887_v23 }
  0xec   :  { %v678_v48 = vmul.f32 0.001308, %v1934_v18  ;;  %v1306_v35 = vpop.eup %1305  ;;  %v783_v15 = vmul.f32 %v1304_v31, %v660_v39  ;;  %v1940_v36 = vsel %vm585_vm6, %v586_v0, %v584_v11  ;;  %v614_v52 = vmul.f32 0.010328, %v1934_v18 }
  0xed   :  { %v785_v37 = vmul.f32 %v1306_v35, %v661_v62  ;;  %v679_v38 = vmul.f32 0.001308, %v1940_v36  ;;  %v1308_v3 = vpop.eup %1307  ;;  %v615_v26 = vmul.f32 0.010328, %v1940_v36 }
  0xee   :  { %v694_v50 = vadd.f32 0.189269, %v678_v48  ;;  %v804_v33 = vsub.f32 %v1900_v28, %v783_v15  ;;  %v1310_v56 = vpop.eup %1309  ;;  %v630_v7 = vadd.f32 0.802853, %v614_v52  ;;  %v871_v52 = vld [vmem:[#allocation8 + $0x68] sm:$0xff] }
  0xef   :  { %v805_v10 = vsub.f32 %v1902_v19, %v785_v37  ;;  %v695_v21 = vadd.f32 0.189269, %v679_v38  ;;  %v1312_v30 = vpop.eup %1311  ;;  %v869_v19 = vld [vmem:[#allocation8 + $0x58] sm:$0xff]  ;;  %v631_v27 = vadd.f32 0.802853, %v615_v26 }
  0xf0   :  { %v710_v40 = vmul.f32 %v694_v50, %v1934_v18  ;;  %v836_v53 = vsub.f32 0.0, %v804_v33  ;;  %v1314_v63 = vpop.eup %1313  ;;  %v471_v8 = vmul.f32 0.6931472, %v1312_v30  ;;  %v646_v6 = vmul.f32 %v630_v7, %v1934_v18  ;;  %v889_v7 = vld [vmem:[#allocation10 + $0x78] sm:$0xff] }
  0xf1   :  { %v837_v14 = vsub.f32 0.0, %v805_v10  ;;  %v711_v57 = vmul.f32 %v695_v21, %v1940_v36  ;;  %v473_v47 = vmul.f32 0.6931472, %v1314_v63  ;;  %v647_v2 = vmul.f32 %v631_v27, %v1940_v36 }
  0xf2   :  { %v726_v24 = vadd.f32 1.432788, %v710_v40  ;;  %v852_v28 = vsel %vm820_vm7, %v836_v53, %v804_v33  ;;  %v488_v4 = vmul.f32 -2.0, %v471_v8  ;;  %v662_v51 = vadd.f32 2.515517, %v646_v6  ;;  %v870_v53 = vld [vmem:[#allocation8 + $0x60] sm:$0xff] }
  0xf3   :  { %v853_v25 = vsel %vm821_vm8, %v837_v14, %v805_v10  ;;  %v932_v43 = vmul.f32 %v1308_v3, %v852_v28  ;;  %v727_v34 = vadd.f32 1.432788, %v711_v57  ;;  %v489_v20 = vmul.f32 -2.0, %v473_v47 }
  0xf4   :  { %v742_v22 = vmul.f32 %v726_v24, %v1934_v18  ;;  %v933_v9 = vmul.f32 %v1310_v56, %v853_v25  ;;  %v663_v39 = vadd.f32 2.515517, %v647_v2  ;;  %vm590_vm9 = vcmp.eq.f32.partialorder %v488_v4, inf }
  0xf5   :  { %v948_v5 = vadd.f32 %v932_v43, %v868_v13  ;;  %v743_v54 = vmul.f32 %v727_v34, %v1940_v36  ;;  %v593_v0 = vand.u32 2147483648, %v488_v4  ;;  %vm592_vm10 = vcmp.eq.f32.partialorder %v488_v4, 0.0 }
  0xf6   :  { %v758_v59 = vadd.f32 1.0, %v742_v22  ;;  %v949_v58 = vadd.f32 %v933_v9, %v869_v19  ;;  %vm597_vm12 = vcmp.eq.f32.partialorder %v489_v20, inf  ;;  %v600_v11 = vand.u32 2147483648, %v489_v20 }
  0xf7   :  { %v759_v17 = vadd.f32 1.0, %v743_v54  ;;  %vm599_vm13 = vcmp.eq.f32.partialorder %v489_v20, 0.0  ;;  %v918_v47 = vmul.f32 1.442695, %v888_v49 }
  0xf8   :  { %1315 = vrcp.f32 %v758_v59  ;;  %v1190_v44 = vpack.c.bf16 %v949_v58, %v948_v5  ;;  %v920_v58 = vmul.f32 1.442695, %v889_v7 }
  0xf9   :  { %1317 = vrsqrt.f32 %v488_v4 }
  0xfa   :  { %1319 = vrcp.f32 %v759_v17  ;;  %1191 = vmatpush3.bf16.msra.mxu0 %v1190_v44 }
  0xfb   :  { %1321 = vrsqrt.f32 %v489_v20  ;;  %1192 = vmatprep.subr.bf16.mxu0 %v1434_v1 }
  0xfc   :  { %1323 = vpow2.f32 %v914_v45 }
  0xfd   :  { %1325 = vpow2.f32 %v916_v46 }
 0x102   :  { %v1316_v16 = vpop.eup %1315 }
 0x103   :  { %v787_v55 = vmul.f32 %v1316_v16, %v662_v51  ;;  %v1318_v42 = vpop.eup %1317 }
 0x104   :  { %v1320_v61 = vpop.eup %1319  ;;  %v589_v29 = vmul.f32 %v1318_v42, %v488_v4  ;;  %v872_v42 = vld [vmem:[#allocation8 + $0x70] sm:$0xff] }
 0x105   :  { %v806_v62 = vsub.f32 %v1934_v18, %v787_v55  ;;  %v1322_v48 = vpop.eup %1321  ;;  %v789_v31 = vmul.f32 %v1320_v61, %v663_v39  ;;  %v873_v61 = vld [vmem:[#allocation8 + $0x78] sm:$0xff] }
 0x106   :  { %v1324_v35 = vpop.eup %1323  ;;  %v591_v50 = vsel %vm590_vm9, %v488_v4, %v589_v29  ;;  %v596_v37 = vmul.f32 %v1322_v48, %v489_v20 }
 0x107   :  { %v838_v15 = vsub.f32 0.0, %v806_v62  ;;  %v807_v38 = vsub.f32 %v1940_v36, %v789_v31  ;;  %v594_v33 = vsel %vm592_vm10, %v593_v0, %v591_v50  ;;  %v1326_v10 = vpop.eup %1325 }
 0x108   :  { %v598_v18 = vsel %vm597_vm12, %v489_v20, %v596_v37  ;;  %v680_v3 = vmul.f32 0.001308, %v594_v33  ;;  %v616_v43 = vmul.f32 0.010328, %v594_v33 }
 0x109   :  { %v854_v40 = vsel %vm822_vm11, %v838_v15, %v806_v62  ;;  %v839_v21 = vsub.f32 0.0, %v807_v38  ;;  %v601_v32 = vsel %vm599_vm13, %v600_v11, %v598_v18 }
 0x10a   :  { %v934_v24 = vmul.f32 %v1324_v35, %v854_v40  ;;  %v681_v56 = vmul.f32 0.001308, %v601_v32  ;;  %v696_v57 = vadd.f32 0.189269, %v680_v3  ;;  %v617_v63 = vmul.f32 0.010328, %v601_v32 }
 0x10b   :  { %v855_v14 = vsel %vm823_vm14, %v839_v21, %v807_v38  ;;  %v632_v8 = vadd.f32 0.802853, %v616_v43  ;;  %v955_v35 = vld [vmem:[#allocation5] sm:$0xff] }
 0x10c   :  { %v935_v30 = vmul.f32 %v1326_v10, %v855_v14  ;;  %v950_v28 = vadd.f32 %v934_v24, %v870_v53  ;;  %v697_v13 = vadd.f32 0.189269, %v681_v56  ;;  %v712_v22 = vmul.f32 %v696_v57, %v594_v33 }
 0x10d   :  { %v633_v54 = vadd.f32 0.802853, %v617_v63  ;;  %v648_v4 = vmul.f32 %v632_v8, %v594_v33 }
 0x10e   :  { %v951_v36 = vadd.f32 %v935_v30, %v871_v52  ;;  %v713_v25 = vmul.f32 %v697_v13, %v601_v32  ;;  %v728_v19 = vadd.f32 1.432788, %v712_v22 }
 0x10f   :  { %v649_v17 = vmul.f32 %v633_v54, %v601_v32  ;;  %v664_v23 = vadd.f32 2.515517, %v648_v4 }
 0x110   :  { %v1193_v41 = vpack.c.bf16 %v951_v36, %v950_v28  ;;  %v729_v34 = vadd.f32 1.432788, %v713_v25  ;;  %v744_v9 = vmul.f32 %v728_v19, %v594_v33 }
 0x111   :  { %v665_v45 = vadd.f32 2.515517, %v649_v17 }
 0x112   :  { %1194 = vmatpush3.bf16.msra.mxu0 %v1193_v41  ;;  %v745_v26 = vmul.f32 %v729_v34, %v601_v32  ;;  %v760_v59 = vadd.f32 1.0, %v744_v9 }
 0x113   :  { %1195 = vmatprep.subr.bf16.mxu0 %v1434_v1 }
 0x114   :  { %v761_v5 = vadd.f32 1.0, %v745_v26  ;;  %1327 = vrcp.f32 %v760_v59 }
 0x116   :  { %1329 = vrcp.f32 %v761_v5 }
 0x117   :  { %1331 = vpow2.f32 %v918_v47 }
 0x118   :  { %1333 = vpow2.f32 %v920_v58 }
 0x11e   :  { %v1328_v20 = vpop.eup %1327 }
 0x11f   :  { %v791_v27 = vmul.f32 %v1328_v20, %v664_v23 }
 0x120   :  { %v1330_v44 = vpop.eup %1329 }
 0x121   :  { %v793_v1 = vmul.f32 %v1330_v44, %v665_v45  ;;  %v808_v6 = vsub.f32 %v594_v33, %v791_v27  ;;  %v1332_v2 = vpop.eup %1331 }
 0x122   :  { %v1334_v16 = vpop.eup %1333 }
 0x123   :  { %v809_v46 = vsub.f32 %v601_v32, %v793_v1  ;;  %v840_v51 = vsub.f32 0.0, %v808_v6 }
 0x125   :  { %v841_v39 = vsub.f32 0.0, %v809_v46  ;;  %v856_v55 = vsel %vm824_vm15, %v840_v51, %v808_v6 }
 0x126   :  { %v936_v62 = vmul.f32 %v1332_v2, %v856_v55 }
 0x127   :  { %v857_v0 = vsel %vm825_vm0, %v841_v39, %v809_v46 }
 0x128   :  { %v937_v29 = vmul.f32 %v1334_v16, %v857_v0  ;;  %v952_v48 = vadd.f32 %v936_v62, %v872_v42 }
 0x12a   :  { %v953_v31 = vadd.f32 %v937_v29, %v873_v61 }
 0x12c   :  { %v1196_v11 = vpack.c.bf16 %v953_v31, %v952_v48 }
 0x12e   :  { %1197 = vmatpush3.bf16.msra.mxu0 %v1196_v11 }
 0x131   :  { %1172 = vmatmul.mubr.f32.vlgmr.msra.gmra.mrb[0].mxu0 %v955_v35 }
 0x204   :  { %v1022_v60 = vpop.f32.mrb[0].mxu0 }
 0x205   :  { %v1039_v15 = vadd.f32 %v1121_v12, %v1022_v60  ;;  %v1173_v50 = vpop.f32.mrb[1].mxu0 }
 0x207   :  { %1040 = vst [vmem:[#allocation11] sm:$0xff] %v1039_v15 }
 0x208   :  { %1412 = shalt.err (!%p1409_p0)
}
 0x209   :  { %s1413_s11 = scalar_lea.hbm %s1983_s5, 128 }
 0x20a   :  { %p1414_p1 = scmp.ne.s32.totalorder %s1983_s5, %s1413_s11  ;;  %p1417_p2 = scmp.lt.u32.totalorder %s1413_s11, %s1983_s5 }
 0x20c   :  { %p1419_p3 = pnand %p1417_p2, %p1414_p1 }
 0x20e   :  { %1422 = shalt.err (!%p1419_p3)
}
 0x20f   :  { %1050 = dma.vmem_to_hbm [thread:$0]  %s1048_s7, 128, %s1983_s5, [#allocation7]  }
 0x210   :  { %1427 = dma.done.wait [#allocation7], 128  }
 0x211   :  { %1428 = vsyncadd [#allocation7], 4294967168 }
 0x212   :  { %1054 = vsyncpa [#allocation6], 1 }
 0x213   :  { %1055 = vsyncpa [#allocation9], 1 }
 0x214   :  { %1056 = vsyncpa [#allocation7], 1 }

</bundles_post_ra>
